<compile_context>
chip_gen: v6e
topology: v6e:2x2x1
jax: 0.10.0
libtpu: 0.0.40
codegen_flags: <defaults>
</compile_context>

<pallas_src>
import math

import jax
import jax.numpy as jnp
from jax import lax
from jax.experimental import pallas as pl
from jax.experimental.pallas import tpu as pltpu

# Small shapes consistent with the module (emb_dim divisible by nheads=16).
B, T, E, H = 2, 16, 128, 16
D = E // H              # per-head dim
HID = 2 * E             # MLP hidden dim
W = H * T               # packed per-head score width
LN_EPS = 1e-5
NEG_INF = -1e30


def decoder_layer_kernel(x_ref, regi_ref, wqkv_ref, bqkv_ref, wo_ref, bo_ref,
                         w1_ref, b1_ref, w2_ref, b2_ref, hmask_ref, cmask_ref,
                         o_ref):
    f32, bf16 = jnp.float32, jnp.bfloat16
    x = x_ref[0]          # (T, E) f32
    regi = regi_ref[0]    # (T, E) f32

    # ---- LayerNorm(x); gamma/beta are folded into the fused k/v weights/biases.
    mu = jnp.mean(x, axis=-1, keepdims=True)
    xc = x - mu
    var = jnp.mean(xc * xc, axis=-1, keepdims=True)
    xhat = xc * lax.rsqrt(var + LN_EPS)

    regi_bf = regi.astype(bf16)
    xhat_bf = xhat.astype(bf16)

    # ---- fused (outer Linear ∘ MHA in_proj) projections: three dense dots.
    #      1/sqrt(D) is folded into the q weight/bias at parameter-prep time.
    qp = jnp.dot(regi_bf, wqkv_ref[0], preferred_element_type=f32) + bqkv_ref[0]
    kp = jnp.dot(xhat_bf, wqkv_ref[1], preferred_element_type=f32) + bqkv_ref[1]
    vp = jnp.dot(xhat_bf, wqkv_ref[2], preferred_element_type=f32) + bqkv_ref[2]

    # ---- head-packed attention: no (T,H,D) relayouts, no tiny D=8 matmuls.
    hmask = hmask_ref[...]                                          # (W, E) bf16
    k_exp = jnp.broadcast_to(kp.astype(bf16)[None], (H, T, E)).reshape(W, E) * hmask
    v_exp = jnp.broadcast_to(vp.astype(bf16)[None], (H, T, E)).reshape(W, E) * hmask

    # scores[t, h*T + s] = sum_d qp[t, h*D+d] * kp[s, h*D+d]
    scores = lax.dot_general(qp.astype(bf16), k_exp, (((1,), (1,)), ((), ())),
                             preferred_element_type=f32)            # (T, W)
    scores = scores + cmask_ref[...]                                # 0 / -1e30
    p = jnp.exp(scores - jnp.max(scores, axis=-1, keepdims=True))   # unnormalized
    p_bf = p.astype(bf16)

    ctx_num = jnp.dot(p_bf, v_exp, preferred_element_type=f32)      # (T, E)
    # per-(row, head) softmax denominators, already broadcast to (T, E)
    denom = jnp.dot(p_bf, hmask, preferred_element_type=f32)
    ctx = ctx_num * pl.reciprocal(denom, approx=True)

    attn = jnp.dot(ctx.astype(bf16), wo_ref[...],
                   preferred_element_type=f32) + bo_ref[...]

    # ---- residual (dropout p=0 -> identity) + MLP + residual.
    y = x + attn
    h = jnp.dot(y.astype(bf16), w1_ref[...], preferred_element_type=f32) + b1_ref[...]
    # TODO(synk): nn.GELU uses exact erf; tanh approximation used in-kernel
    # (difference < 1e-4 at these magnitudes).
    h = 0.5 * h * (1.0 + jnp.tanh(0.7978845608028654 * (h + 0.044715 * h * h * h)))
    y1 = jnp.dot(h.astype(bf16), w2_ref[...], preferred_element_type=f32) + b2_ref[...]

    o_ref[0, :, :] = (y + y1).astype(o_ref.dtype)


def prepare_params(p):
    """Host-side one-time parameter prep: fuse outer q/k/v Linears with the MHA
    in_proj (folding the LayerNorm affine into the k/v path and 1/sqrt(D) into
    the q path), transpose for x @ W layout, cast matmul weights to bf16, and
    build the static head-packing / additive causal masks."""
    f32, bf16 = jnp.float32, jnp.bfloat16
    scale = 1.0 / math.sqrt(D)
    in_w, in_b = p['in_proj_w'], p['in_proj_b']
    wq_in, wk_in, wv_in = in_w[:E], in_w[E:2 * E], in_w[2 * E:]
    bq_in, bk_in, bv_in = in_b[:E], in_b[E:2 * E], in_b[2 * E:]
    gamma, beta = p['ln_g'], p['ln_b']

    wq_f = (p['wq'].T @ wq_in.T) * scale
    bq_f = (p['bq'] @ wq_in.T + bq_in) * scale
    wk_f = (gamma[:, None] * p['wk'].T) @ wk_in.T
    bk_f = (beta @ p['wk'].T + p['bk']) @ wk_in.T + bk_in
    wv_f = (gamma[:, None] * p['wv'].T) @ wv_in.T
    bv_f = (beta @ p['wv'].T + p['bv']) @ wv_in.T + bv_in

    wqkv = jnp.stack([wq_f, wk_f, wv_f]).astype(bf16)               # (3, E, E)
    bqkv = jnp.stack([bq_f, bk_f, bv_f]).reshape(3, 1, E).astype(f32)

    # head-packing mask: row h*T+s selects head h's D-wide feature slice
    hmask = (jnp.arange(W)[:, None] // T ==
             jnp.arange(E)[None, :] // D).astype(bf16)              # (W, E)
    # additive causal mask (PyTorch tril(..., diagonal=1); its +1 on allowed
    # entries is constant per row over the allowed set and cancels in softmax)
    cmask = jnp.where(jnp.arange(W)[None, :] % T <= jnp.arange(T)[:, None] + 1,
                      0.0, NEG_INF).astype(f32)                     # (T, W)

    return dict(
        wqkv=wqkv, bqkv=bqkv,
        wo=p['out_w'].T.astype(bf16), bo=p['out_b'].reshape(1, E).astype(f32),
        w1=p['w1'].T.astype(bf16), b1=p['b1'].reshape(1, HID).astype(f32),
        w2=p['w2'].T.astype(bf16), b2=p['b2'].reshape(1, E).astype(f32),
        hmask=hmask, cmask=cmask,
    )


def selm_decoder_cross_attention_layer(x, regi, kp):
    flops = B * (3 * 2 * T * E * E        # fused q/k/v projections
                 + 2 * T * E * W          # scores
                 + 2 * 2 * T * W * E      # PV + denominators
                 + 2 * T * E * E          # out projection
                 + 2 * 2 * T * E * HID)   # MLP
    transcendentals = B * (T * W + T * HID + 2 * T)
    operands = (x, regi, kp['wqkv'], kp['bqkv'], kp['wo'], kp['bo'],
                kp['w1'], kp['b1'], kp['w2'], kp['b2'], kp['hmask'], kp['cmask'])
    bytes_accessed = int(sum(int(a.nbytes) for a in operands)) + B * T * E * 4

    def const(shape):
        n = len(shape)
        return pl.BlockSpec(shape, lambda b, _n=n: (0,) * _n)

    return pl.pallas_call(
        decoder_layer_kernel,
        out_shape=jax.ShapeDtypeStruct((B, T, E), x.dtype),
        grid=(B,),
        in_specs=[
            pl.BlockSpec((1, T, E), lambda b: (b, 0, 0)),   # x
            pl.BlockSpec((1, T, E), lambda b: (b, 0, 0)),   # regi
            const((3, E, E)),                               # fused q/k/v W (bf16)
            const((3, 1, E)),                               # fused q/k/v biases
            const((E, E)),                                  # out_proj W^T (bf16)
            const((1, E)),                                  # out_proj bias
            const((E, HID)),                                # MLP W1^T (bf16)
            const((1, HID)),                                # MLP b1
            const((HID, E)),                                # MLP W2^T (bf16)
            const((1, E)),                                  # MLP b2
            const((W, E)),                                  # head-packing mask (bf16)
            const((T, W)),                                  # additive causal mask
        ],
        out_specs=pl.BlockSpec((1, T, E), lambda b: (b, 0, 0)),
        compiler_params=pltpu.CompilerParams(dimension_semantics=("parallel",)),
        cost_estimate=pl.CostEstimate(flops=flops, transcendentals=transcendentals,
                                      bytes_accessed=bytes_accessed),
    )(*operands)


def reference_forward(x, regi, p):
    """Pure-JAX f32 mirror of the PyTorch module forward."""
    from jax.scipy.special import erf
    mu = x.mean(-1, keepdims=True)
    var = ((x - mu) ** 2).mean(-1, keepdims=True)
    y = (x - mu) / jnp.sqrt(var + LN_EPS) * p['ln_g'] + p['ln_b']

    q0 = regi @ p['wq'].T + p['bq']
    k0 = y @ p['wk'].T + p['bk']
    v0 = y @ p['wv'].T + p['bv']

    in_w, in_b = p['in_proj_w'], p['in_proj_b']
    qp = q0 @ in_w[:E].T + in_b[:E]
    kp = k0 @ in_w[E:2 * E].T + in_b[E:2 * E]
    vp = v0 @ in_w[2 * E:].T + in_b[2 * E:]

    qh = qp.reshape(B, T, H, D).transpose(0, 2, 1, 3)
    kh = kp.reshape(B, T, H, D).transpose(0, 2, 1, 3)
    vh = vp.reshape(B, T, H, D).transpose(0, 2, 1, 3)

    tril = jnp.tril(jnp.ones((T, T), jnp.float32), k=1)
    mask = jnp.where(tril == 0, -jnp.inf, tril)          # exact PyTorch mask
    scores = jnp.einsum('bhtd,bhsd->bhts', qh / math.sqrt(D), kh) + mask[None, None]
    pattn = jax.nn.softmax(scores, axis=-1)
    ctx = jnp.einsum('bhts,bhsd->bhtd', pattn, vh).transpose(0, 2, 1, 3).reshape(B, T, E)
    attn = ctx @ p['out_w'].T + p['out_b']

    y = x + attn
    h = y @ p['w1'].T + p['b1']
    h = 0.5 * h * (1.0 + erf(h / math.sqrt(2.0)))        # exact nn.GELU
    y1 = h @ p['w2'].T + p['b2']
    return y + y1


if __name__ == "__main__":
    key = jax.random.PRNGKey(0)
    ks = iter(jax.random.split(key, 20))

    def rnd(shape, s):
        return jax.random.normal(next(ks), shape, jnp.float32) * s

    WS, BS = 0.06, 0.02   # weight / bias scales
    raw = dict(
        ln_g=1.0 + rnd((E,), 0.05), ln_b=rnd((E,), BS),
        wq=rnd((E, E), WS), bq=rnd((E,), BS),
        wk=rnd((E, E), WS), bk=rnd((E,), BS),
        wv=rnd((E, E), WS), bv=rnd((E,), BS),
        in_proj_w=rnd((3 * E, E), WS), in_proj_b=rnd((3 * E,), BS),
        out_w=rnd((E, E), WS), out_b=rnd((E,), BS),
        w1=rnd((HID, E), WS), b1=rnd((HID,), BS),
        w2=rnd((E, HID), WS), b2=rnd((E,), BS),
    )
    x = jax.random.normal(next(ks), (B, T, E), jnp.float32)
    regi = jax.random.normal(next(ks), (B, T, E), jnp.float32)

    kparams = prepare_params(raw)
    out = selm_decoder_cross_attention_layer(x, regi, kparams)
    out = jax.block_until_ready(out)

    ref = reference_forward(x, regi, raw)
    assert out.shape == (B, T, E)
    max_err = float(jnp.max(jnp.abs(out - ref)))
    assert jnp.allclose(out, ref, atol=2e-2, rtol=2e-2), \
        f"mismatch vs reference (max abs err {max_err})"

    print("KERNEL_OK")
</pallas_src>

<mosaic_0001>
module attributes {stable_mosaic.version = 11 : i64} {
  func.func @decoder_layer_kernel(%arg0: i32, %arg1: memref<1x16x128xf32, #tpu.memory_space<vmem>>, %arg2: memref<1x16x128xf32, #tpu.memory_space<vmem>>, %arg3: memref<3x128x128xbf16, #tpu.memory_space<vmem>>, %arg4: memref<3x1x128xf32, #tpu.memory_space<vmem>>, %arg5: memref<128x128xbf16, #tpu.memory_space<vmem>>, %arg6: memref<1x128xf32, #tpu.memory_space<vmem>>, %arg7: memref<128x256xbf16, #tpu.memory_space<vmem>>, %arg8: memref<1x256xf32, #tpu.memory_space<vmem>>, %arg9: memref<256x128xbf16, #tpu.memory_space<vmem>>, %arg10: memref<1x128xf32, #tpu.memory_space<vmem>>, %arg11: memref<256x128xbf16, #tpu.memory_space<vmem>>, %arg12: memref<16x256xf32, #tpu.memory_space<vmem>>, %arg13: memref<1x16x128xf32, #tpu.memory_space<vmem>>) attributes {dimension_semantics = [#tpu.dimension_semantics<parallel>], iteration_bounds = array<i64: 2>, scalar_prefetch = 0 : i64, scratch_operands = 0 : i64, tpu.core_type = #tpu.core_type<tc>, window_params = [{transform_indices = @transform_0, window_bounds = array<i64: 1, 16, 128>}, {transform_indices = @transform_1, window_bounds = array<i64: 1, 16, 128>}, {pipeline_mode = #tpu.pipeline_mode<synchronous>, transform_indices = @transform_2, window_bounds = array<i64: 3, 128, 128>}, {pipeline_mode = #tpu.pipeline_mode<synchronous>, transform_indices = @transform_3, window_bounds = array<i64: 3, 1, 128>}, {pipeline_mode = #tpu.pipeline_mode<synchronous>, transform_indices = @transform_4, window_bounds = array<i64: 128, 128>}, {pipeline_mode = #tpu.pipeline_mode<synchronous>, transform_indices = @transform_5, window_bounds = array<i64: 1, 128>}, {pipeline_mode = #tpu.pipeline_mode<synchronous>, transform_indices = @transform_6, window_bounds = array<i64: 128, 256>}, {pipeline_mode = #tpu.pipeline_mode<synchronous>, transform_indices = @transform_7, window_bounds = array<i64: 1, 256>}, {pipeline_mode = #tpu.pipeline_mode<synchronous>, transform_indices = @transform_8, window_bounds = array<i64: 256, 128>}, {pipeline_mode = #tpu.pipeline_mode<synchronous>, transform_indices = @transform_9, window_bounds = array<i64: 1, 128>}, {pipeline_mode = #tpu.pipeline_mode<synchronous>, transform_indices = @transform_10, window_bounds = array<i64: 256, 128>}, {pipeline_mode = #tpu.pipeline_mode<synchronous>, transform_indices = @transform_11, window_bounds = array<i64: 16, 256>}, {transform_indices = @transform_12, window_bounds = array<i64: 1, 16, 128>}]} {
    %c0 = arith.constant 0 : index
    %c0_0 = arith.constant 0 : index
    %c0_1 = arith.constant 0 : index
    %0 = vector.load %arg1[%c0, %c0_0, %c0_1] : memref<1x16x128xf32, #tpu.memory_space<vmem>>, vector<1x16x128xf32>
    %1 = vector.shape_cast %0 : vector<1x16x128xf32> to vector<16x128xf32>
    %c0_2 = arith.constant 0 : index
    %c0_3 = arith.constant 0 : index
    %c0_4 = arith.constant 0 : index
    %2 = vector.load %arg2[%c0_2, %c0_3, %c0_4] : memref<1x16x128xf32, #tpu.memory_space<vmem>>, vector<1x16x128xf32>
    %3 = vector.shape_cast %2 : vector<1x16x128xf32> to vector<16x128xf32>
    %cst = arith.constant dense<0.000000e+00> : vector<16xf32>
    %4 = vector.multi_reduction <add>, %1, %cst [1] : vector<16x128xf32> to vector<16xf32>
    %5 = vector.shape_cast %4 : vector<16xf32> to vector<16x1xf32>
    %cst_5 = arith.constant 1.280000e+02 : f32
    %6 = vector.broadcast %cst_5 : f32 to vector<16x1xf32>
    %7 = arith.divf %5, %6 : vector<16x1xf32>
    %8 = vector.broadcast %7 : vector<16x1xf32> to vector<16x128xf32>
    %9 = arith.subf %1, %8 : vector<16x128xf32>
    %10 = arith.mulf %9, %9 : vector<16x128xf32>
    %cst_6 = arith.constant dense<0.000000e+00> : vector<16xf32>
    %11 = vector.multi_reduction <add>, %10, %cst_6 [1] : vector<16x128xf32> to vector<16xf32>
    %12 = vector.shape_cast %11 : vector<16xf32> to vector<16x1xf32>
    %cst_7 = arith.constant 1.280000e+02 : f32
    %13 = vector.broadcast %cst_7 : f32 to vector<16x1xf32>
    %14 = arith.divf %12, %13 : vector<16x1xf32>
    %cst_8 = arith.constant 9.99999974E-6 : f32
    %15 = vector.broadcast %cst_8 : f32 to vector<16x1xf32>
    %16 = arith.addf %14, %15 : vector<16x1xf32>
    %17 = math.rsqrt %16 : vector<16x1xf32>
    %18 = vector.broadcast %17 : vector<16x1xf32> to vector<16x128xf32>
    %19 = arith.mulf %9, %18 : vector<16x128xf32>
    %20 = arith.truncf %3 : vector<16x128xf32> to vector<16x128xbf16>
    %21 = arith.truncf %19 : vector<16x128xf32> to vector<16x128xbf16>
    %c0_9 = arith.constant 0 : index
    %c0_10 = arith.constant 0 : index
    %c0_11 = arith.constant 0 : index
    %22 = vector.load %arg3[%c0_9, %c0_10, %c0_11] : memref<3x128x128xbf16, #tpu.memory_space<vmem>>, vector<1x128x128xbf16>
    %23 = vector.shape_cast %22 : vector<1x128x128xbf16> to vector<128x128xbf16>
    %cst_12 = arith.constant dense<0.000000e+00> : vector<16x128xf32>
    %24 = tpu.matmul %20, %23, %cst_12 {dimension_numbers = #tpu.dot_dimension_numbers<[1], [0], [0], [1], [0, 0, 1, 1], [], []>} : vector<16x128xbf16>, vector<128x128xbf16>, vector<16x128xf32> -> vector<16x128xf32>
    %c0_13 = arith.constant 0 : index
    %c0_14 = arith.constant 0 : index
    %c0_15 = arith.constant 0 : index
    %25 = vector.load %arg4[%c0_13, %c0_14, %c0_15] : memref<3x1x128xf32, #tpu.memory_space<vmem>>, vector<1x1x128xf32>
    %26 = vector.shape_cast %25 : vector<1x1x128xf32> to vector<1x128xf32>
    %27 = vector.broadcast %26 : vector<1x128xf32> to vector<16x128xf32>
    %28 = arith.addf %24, %27 : vector<16x128xf32>
    %c1 = arith.constant 1 : index
    %c0_16 = arith.constant 0 : index
    %c0_17 = arith.constant 0 : index
    %29 = vector.load %arg3[%c1, %c0_16, %c0_17] : memref<3x128x128xbf16, #tpu.memory_space<vmem>>, vector<1x128x128xbf16>
    %30 = vector.shape_cast %29 : vector<1x128x128xbf16> to vector<128x128xbf16>
    %cst_18 = arith.constant dense<0.000000e+00> : vector<16x128xf32>
    %31 = tpu.matmul %21, %30, %cst_18 {dimension_numbers = #tpu.dot_dimension_numbers<[1], [0], [0], [1], [0, 0, 1, 1], [], []>} : vector<16x128xbf16>, vector<128x128xbf16>, vector<16x128xf32> -> vector<16x128xf32>
    %c1_19 = arith.constant 1 : index
    %c0_20 = arith.constant 0 : index
    %c0_21 = arith.constant 0 : index
    %32 = vector.load %arg4[%c1_19, %c0_20, %c0_21] : memref<3x1x128xf32, #tpu.memory_space<vmem>>, vector<1x1x128xf32>
    %33 = vector.shape_cast %32 : vector<1x1x128xf32> to vector<1x128xf32>
    %34 = vector.broadcast %33 : vector<1x128xf32> to vector<16x128xf32>
    %35 = arith.addf %31, %34 : vector<16x128xf32>
    %c2 = arith.constant 2 : index
    %c0_22 = arith.constant 0 : index
    %c0_23 = arith.constant 0 : index
    %36 = vector.load %arg3[%c2, %c0_22, %c0_23] : memref<3x128x128xbf16, #tpu.memory_space<vmem>>, vector<1x128x128xbf16>
    %37 = vector.shape_cast %36 : vector<1x128x128xbf16> to vector<128x128xbf16>
    %cst_24 = arith.constant dense<0.000000e+00> : vector<16x128xf32>
    %38 = tpu.matmul %21, %37, %cst_24 {dimension_numbers = #tpu.dot_dimension_numbers<[1], [0], [0], [1], [0, 0, 1, 1], [], []>} : vector<16x128xbf16>, vector<128x128xbf16>, vector<16x128xf32> -> vector<16x128xf32>
    %c2_25 = arith.constant 2 : index
    %c0_26 = arith.constant 0 : index
    %c0_27 = arith.constant 0 : index
    %39 = vector.load %arg4[%c2_25, %c0_26, %c0_27] : memref<3x1x128xf32, #tpu.memory_space<vmem>>, vector<1x1x128xf32>
    %40 = vector.shape_cast %39 : vector<1x1x128xf32> to vector<1x128xf32>
    %41 = vector.broadcast %40 : vector<1x128xf32> to vector<16x128xf32>
    %42 = arith.addf %38, %41 : vector<16x128xf32>
    %c0_28 = arith.constant 0 : index
    %c0_29 = arith.constant 0 : index
    %43 = vector.load %arg11[%c0_28, %c0_29] : memref<256x128xbf16, #tpu.memory_space<vmem>>, vector<256x128xbf16>
    %44 = arith.truncf %35 : vector<16x128xf32> to vector<16x128xbf16>
    %45 = vector.shape_cast %44 : vector<16x128xbf16> to vector<1x16x128xbf16>
    %46 = vector.shape_cast %45 : vector<1x16x128xbf16> to vector<1x16x128xbf16>
    %47 = vector.broadcast %46 : vector<1x16x128xbf16> to vector<16x16x128xbf16>
    %48 = vector.shape_cast %47 : vector<16x16x128xbf16> to vector<256x128xbf16>
    %49 = arith.mulf %48, %43 : vector<256x128xbf16>
    %50 = arith.truncf %42 : vector<16x128xf32> to vector<16x128xbf16>
    %51 = vector.shape_cast %50 : vector<16x128xbf16> to vector<1x16x128xbf16>
    %52 = vector.shape_cast %51 : vector<1x16x128xbf16> to vector<1x16x128xbf16>
    %53 = vector.broadcast %52 : vector<1x16x128xbf16> to vector<16x16x128xbf16>
    %54 = vector.shape_cast %53 : vector<16x16x128xbf16> to vector<256x128xbf16>
    %55 = arith.mulf %54, %43 : vector<256x128xbf16>
    %56 = arith.truncf %28 : vector<16x128xf32> to vector<16x128xbf16>
    %cst_30 = arith.constant dense<0.000000e+00> : vector<16x256xf32>
    %57 = tpu.matmul %56, %49, %cst_30 {dimension_numbers = #tpu.dot_dimension_numbers<[1], [1], [0], [0], [0, 0, 1, 0], [], []>} : vector<16x128xbf16>, vector<256x128xbf16>, vector<16x256xf32> -> vector<16x256xf32>
    %c0_31 = arith.constant 0 : index
    %c0_32 = arith.constant 0 : index
    %58 = vector.load %arg12[%c0_31, %c0_32] : memref<16x256xf32, #tpu.memory_space<vmem>>, vector<16x256xf32>
    %59 = arith.addf %57, %58 : vector<16x256xf32>
    %cst_33 = arith.constant dense<0xFF800000> : vector<16xf32>
    %60 = vector.multi_reduction <maximumf>, %59, %cst_33 [1] : vector<16x256xf32> to vector<16xf32>
    %61 = vector.shape_cast %60 : vector<16xf32> to vector<16x1xf32>
    %62 = vector.broadcast %61 : vector<16x1xf32> to vector<16x256xf32>
    %63 = arith.subf %59, %62 : vector<16x256xf32>
    %64 = math.exp %63 : vector<16x256xf32>
    %65 = arith.truncf %64 : vector<16x256xf32> to vector<16x256xbf16>
    %cst_34 = arith.constant dense<0.000000e+00> : vector<16x128xf32>
    %66 = tpu.matmul %65, %55, %cst_34 {dimension_numbers = #tpu.dot_dimension_numbers<[1], [0], [0], [1], [0, 0, 1, 1], [], []>} : vector<16x256xbf16>, vector<256x128xbf16>, vector<16x128xf32> -> vector<16x128xf32>
    %cst_35 = arith.constant dense<0.000000e+00> : vector<16x128xf32>
    %67 = tpu.matmul %65, %43, %cst_35 {dimension_numbers = #tpu.dot_dimension_numbers<[1], [0], [0], [1], [0, 0, 1, 1], [], []>} : vector<16x256xbf16>, vector<256x128xbf16>, vector<16x128xf32> -> vector<16x128xf32>
    %68 = tpu.reciprocal %67 {approx = true} : vector<16x128xf32> -> vector<16x128xf32>
    %69 = arith.mulf %66, %68 : vector<16x128xf32>
    %70 = arith.truncf %69 : vector<16x128xf32> to vector<16x128xbf16>
    %c0_36 = arith.constant 0 : index
    %c0_37 = arith.constant 0 : index
    %71 = vector.load %arg5[%c0_36, %c0_37] : memref<128x128xbf16, #tpu.memory_space<vmem>>, vector<128x128xbf16>
    %cst_38 = arith.constant dense<0.000000e+00> : vector<16x128xf32>
    %72 = tpu.matmul %70, %71, %cst_38 {dimension_numbers = #tpu.dot_dimension_numbers<[1], [0], [0], [1], [0, 0, 1, 1], [], []>} : vector<16x128xbf16>, vector<128x128xbf16>, vector<16x128xf32> -> vector<16x128xf32>
    %c0_39 = arith.constant 0 : index
    %c0_40 = arith.constant 0 : index
    %73 = vector.load %arg6[%c0_39, %c0_40] : memref<1x128xf32, #tpu.memory_space<vmem>>, vector<1x128xf32>
    %74 = vector.broadcast %73 : vector<1x128xf32> to vector<16x128xf32>
    %75 = arith.addf %72, %74 : vector<16x128xf32>
    %76 = arith.addf %1, %75 : vector<16x128xf32>
    %77 = arith.truncf %76 : vector<16x128xf32> to vector<16x128xbf16>
    %c0_41 = arith.constant 0 : index
    %c0_42 = arith.constant 0 : index
    %78 = vector.load %arg7[%c0_41, %c0_42] : memref<128x256xbf16, #tpu.memory_space<vmem>>, vector<128x256xbf16>
    %cst_43 = arith.constant dense<0.000000e+00> : vector<16x256xf32>
    %79 = tpu.matmul %77, %78, %cst_43 {dimension_numbers = #tpu.dot_dimension_numbers<[1], [0], [0], [1], [0, 0, 1, 1], [], []>} : vector<16x128xbf16>, vector<128x256xbf16>, vector<16x256xf32> -> vector<16x256xf32>
    %c0_44 = arith.constant 0 : index
    %c0_45 = arith.constant 0 : index
    %80 = vector.load %arg8[%c0_44, %c0_45] : memref<1x256xf32, #tpu.memory_space<vmem>>, vector<1x256xf32>
    %81 = vector.broadcast %80 : vector<1x256xf32> to vector<16x256xf32>
    %82 = arith.addf %79, %81 : vector<16x256xf32>
    %cst_46 = arith.constant 5.000000e-01 : f32
    %83 = vector.broadcast %cst_46 : f32 to vector<16x256xf32>
    %84 = arith.mulf %83, %82 : vector<16x256xf32>
    %cst_47 = arith.constant 4.471500e-02 : f32
    %85 = vector.broadcast %cst_47 : f32 to vector<16x256xf32>
    %86 = arith.mulf %85, %82 : vector<16x256xf32>
    %87 = arith.mulf %86, %82 : vector<16x256xf32>
    %88 = arith.mulf %87, %82 : vector<16x256xf32>
    %89 = arith.addf %82, %88 : vector<16x256xf32>
    %cst_48 = arith.constant 0.797884583 : f32
    %90 = vector.broadcast %cst_48 : f32 to vector<16x256xf32>
    %91 = arith.mulf %90, %89 : vector<16x256xf32>
    %92 = math.tanh %91 : vector<16x256xf32>
    %cst_49 = arith.constant 1.000000e+00 : f32
    %93 = vector.broadcast %cst_49 : f32 to vector<16x256xf32>
    %94 = arith.addf %93, %92 : vector<16x256xf32>
    %95 = arith.mulf %84, %94 : vector<16x256xf32>
    %96 = arith.truncf %95 : vector<16x256xf32> to vector<16x256xbf16>
    %c0_50 = arith.constant 0 : index
    %c0_51 = arith.constant 0 : index
    %97 = vector.load %arg9[%c0_50, %c0_51] : memref<256x128xbf16, #tpu.memory_space<vmem>>, vector<256x128xbf16>
    %cst_52 = arith.constant dense<0.000000e+00> : vector<16x128xf32>
    %98 = tpu.matmul %96, %97, %cst_52 {dimension_numbers = #tpu.dot_dimension_numbers<[1], [0], [0], [1], [0, 0, 1, 1], [], []>} : vector<16x256xbf16>, vector<256x128xbf16>, vector<16x128xf32> -> vector<16x128xf32>
    %c0_53 = arith.constant 0 : index
    %c0_54 = arith.constant 0 : index
    %99 = vector.load %arg10[%c0_53, %c0_54] : memref<1x128xf32, #tpu.memory_space<vmem>>, vector<1x128xf32>
    %100 = vector.broadcast %99 : vector<1x128xf32> to vector<16x128xf32>
    %101 = arith.addf %98, %100 : vector<16x128xf32>
    %102 = arith.addf %76, %101 : vector<16x128xf32>
    %c0_55 = arith.constant 0 : index
    %c0_56 = arith.constant 0 : index
    %c0_57 = arith.constant 0 : index
    %103 = vector.load %arg13[%c0_55, %c0_56, %c0_57] : memref<1x16x128xf32, #tpu.memory_space<vmem>>, vector<1x16x128xf32>
    %104 = vector.shape_cast %103 : vector<1x16x128xf32> to vector<16x128xf32>
    %105 = vector.shape_cast %102 : vector<16x128xf32> to vector<1x16x128xf32>
    tpu.vector_store %arg13[%c0_55, %c0_56, %c0_57], %105 {strides = array<i32>} : memref<1x16x128xf32, #tpu.memory_space<vmem>>, vector<1x16x128xf32>,
    return
  }
  func.func @transform_0(%arg0: i32) -> (i32, i32, i32) {
    %c0_i32 = arith.constant 0 : i32
    %c0_i32_0 = arith.constant 0 : i32
    %c0_i32_1 = arith.constant 0 : i32
    return %arg0, %c0_i32, %c0_i32_0 : i32, i32, i32
  }
  func.func @transform_1(%arg0: i32) -> (i32, i32, i32) {
    %c0_i32 = arith.constant 0 : i32
    %c0_i32_0 = arith.constant 0 : i32
    %c0_i32_1 = arith.constant 0 : i32
    return %arg0, %c0_i32, %c0_i32_0 : i32, i32, i32
  }
  func.func @transform_2(%arg0: i32) -> (i32, i32, i32) {
    %c0_i32 = arith.constant 0 : i32
    %c0_i32_0 = arith.constant 0 : i32
    %c0_i32_1 = arith.constant 0 : i32
    %c0_i32_2 = arith.constant 0 : i32
    return %c0_i32, %c0_i32_0, %c0_i32_1 : i32, i32, i32
  }
  func.func @transform_3(%arg0: i32) -> (i32, i32, i32) {
    %c0_i32 = arith.constant 0 : i32
    %c0_i32_0 = arith.constant 0 : i32
    %c0_i32_1 = arith.constant 0 : i32
    %c0_i32_2 = arith.constant 0 : i32
    return %c0_i32, %c0_i32_0, %c0_i32_1 : i32, i32, i32
  }
  func.func @transform_4(%arg0: i32) -> (i32, i32) {
    %c0_i32 = arith.constant 0 : i32
    %c0_i32_0 = arith.constant 0 : i32
    %c0_i32_1 = arith.constant 0 : i32
    return %c0_i32, %c0_i32_0 : i32, i32
  }
  func.func @transform_5(%arg0: i32) -> (i32, i32) {
    %c0_i32 = arith.constant 0 : i32
    %c0_i32_0 = arith.constant 0 : i32
    %c0_i32_1 = arith.constant 0 : i32
    return %c0_i32, %c0_i32_0 : i32, i32
  }
  func.func @transform_6(%arg0: i32) -> (i32, i32) {
    %c0_i32 = arith.constant 0 : i32
    %c0_i32_0 = arith.constant 0 : i32
    %c0_i32_1 = arith.constant 0 : i32
    return %c0_i32, %c0_i32_0 : i32, i32
  }
  func.func @transform_7(%arg0: i32) -> (i32, i32) {
    %c0_i32 = arith.constant 0 : i32
    %c0_i32_0 = arith.constant 0 : i32
    %c0_i32_1 = arith.constant 0 : i32
    return %c0_i32, %c0_i32_0 : i32, i32
  }
  func.func @transform_8(%arg0: i32) -> (i32, i32) {
    %c0_i32 = arith.constant 0 : i32
    %c0_i32_0 = arith.constant 0 : i32
    %c0_i32_1 = arith.constant 0 : i32
    return %c0_i32, %c0_i32_0 : i32, i32
  }
  func.func @transform_9(%arg0: i32) -> (i32, i32) {
    %c0_i32 = arith.constant 0 : i32
    %c0_i32_0 = arith.constant 0 : i32
    %c0_i32_1 = arith.constant 0 : i32
    return %c0_i32, %c0_i32_0 : i32, i32
  }
  func.func @transform_10(%arg0: i32) -> (i32, i32) {
    %c0_i32 = arith.constant 0 : i32
    %c0_i32_0 = arith.constant 0 : i32
    %c0_i32_1 = arith.constant 0 : i32
    return %c0_i32, %c0_i32_0 : i32, i32
  }
  func.func @transform_11(%arg0: i32) -> (i32, i32) {
    %c0_i32 = arith.constant 0 : i32
    %c0_i32_0 = arith.constant 0 : i32
    %c0_i32_1 = arith.constant 0 : i32
    return %c0_i32, %c0_i32_0 : i32, i32
  }
  func.func @transform_12(%arg0: i32) -> (i32, i32, i32) {
    %c0_i32 = arith.constant 0 : i32
    %c0_i32_0 = arith.constant 0 : i32
    %c0_i32_1 = arith.constant 0 : i32
    return %arg0, %c0_i32, %c0_i32_0 : i32, i32, i32
  }
}

</mosaic_0001>

<bundles_post_ra>
// kernel: tpu_custom_call.1
= control target key start
LH: loop header
LB: loop body
LE: loop exit
PB: predicated region body
PF: predicated region fallthrough
CT: control target
= control target key end

     0   :  { %s3353_s0 = inlined_call_operand.hbm [shape: f32[2,16,128], index: 0, kind: input, shape index: {}]   ;;  %s3354_s1 = inlined_call_operand.hbm [shape: f32[2,16,128], index: 1, kind: input, shape index: {}]   ;;  %s3355_s2 = inlined_call_operand.hbm [shape: bf16[3,128,128], index: 2, kind: input, shape index: {}]   ;;  %s3356_s3 = inlined_call_operand.vmem [shape: f32[3,1,128], index: 3, kind: input, shape index: {}]   ;;  %s3357_s4 = inlined_call_operand.hbm [shape: bf16[128,128], index: 4, kind: input, shape index: {}]   ;;  %s3358_s5 = inlined_call_operand.vmem [shape: f32[1,128], index: 5, kind: input, shape index: {}]   ;;  %s3359_s6 = inlined_call_operand.hbm [shape: bf16[128,256], index: 6, kind: input, shape index: {}]   ;;  %s3360_s7 = inlined_call_operand.vmem [shape: f32[1,256], index: 7, kind: input, shape index: {}]   ;;  %s3361_s8 = inlined_call_operand.hbm [shape: bf16[256,128], index: 8, kind: input, shape index: {}]   ;;  %s3362_s9 = inlined_call_operand.vmem [shape: f32[1,128], index: 9, kind: input, shape index: {}]   ;;  %s3363_s10 = inlined_call_operand.hbm [shape: bf16[256,128], index: 10, kind: input, shape index: {}]   ;;  %s3364_s11 = inlined_call_operand.hbm [shape: f32[16,256], index: 11, kind: input, shape index: {}]   ;;  %s3365_s12 = inlined_call_operand.hbm [shape: f32[2,16,128], index: 12, kind: output, shape index: {}]  }
   0x1   :  { %3376 = sst [smem:[#allocation26_spill]] %s3353_s0 }
   0x2   :  { %3377 = sst [smem:[#allocation27_spill]] %s3355_s2 }
   0x3   :  { %3378 = sst [smem:[#allocation28_spill]] %s3357_s4 }
   0x4   :  { %3379 = sst [smem:[#allocation29_spill]] %s3359_s6 }
   0x5   :  { %3380 = sst [smem:[#allocation30_spill]] %s3361_s8 }
   0x6   :  { %3381 = sst [smem:[#allocation31_spill]] %s3363_s10 }
   0x7   :  { %3382 = sst [smem:[#allocation32_spill]] %s3364_s11 }
   0x8   :  { %17 = vsyncpa [#allocation3], 0 }
   0x9   :  { %19 = vsyncpa [#allocation3 + $0x1], 0 }
   0xa   :  { %20 = vsyncpa [#allocation6], 0 }
   0xb   :  { %22 = vsyncpa [#allocation6 + $0x1], 0 }
   0xc   :  { %23 = vsyncpa [#allocation9], 0 }
   0xd   :  { %24 = vsyncpa [#allocation12], 0 }
   0xe   :  { %25 = vsyncpa [#allocation15], 0 }
   0xf   :  { %26 = vsyncpa [#allocation4], 0 }
  0x10   :  { %28 = vsyncpa [#allocation4 + $0x1], 0  ;;  %s2835_s21 = smov 0   ;;  %s2837_s22 = smov 0  }
  0x11   :  { %s2839_s23 = smov 0   ;;  %s2841_s24 = smov 0  }
  0x12 LB: > { %3383 = sst [smem:[#allocation24_spill]] %s2744_s23  ;;  %s2750_s25 = smov [#allocation7]   ;;  %s2748_s24 = sphi %s2841_s24, %s3420_s24   ;;  %s2744_s23 = sphi %s2839_s23, %s3417_s23   ;;  %s2740_s22 = sphi %s2837_s22, %s3419_s22   ;;  %s2736_s21 = sphi %s2835_s21, %s3418_s21  }
  0x13   : > { %s339_s26 = sshll.u32 %s2750_s25, 4  ;;  %s2856_s27 = sadd.s32 4294967295, %s2748_s24   ;;  %s340_s26 = int_to_ptr.vmem [resolvable:$true] %s339_s26 }
  0x14   : > { %p1898_p0 = scmp.ge.s32.totalorder %s2748_s24, 1  ;;  %p3373_p1 = scmp.eq.s32.totalorder %s2856_s27, 0 }
  0x15   : > { %p327_p2 = scmp.lt.s32.totalorder %s2748_s24, 3  ;;  %s2751_s29 = smov [#allocation8]  }
  0x16   : > { %s355_s30 = sshll.u32 %s2751_s29, 4  ;;  %s2752_s14 = smov [#allocation11]   ;;  %s2874_s30 = int_to_ptr.vmem [resolvable:$true] %s355_s30 }
  0x17   : > { %p2861_p3 = pnand %p1898_p0, %p327_p2  ;;  %s387_s15 = sshll.u32 %s2752_s14, 4  ;;  %s2876_s15 = int_to_ptr.vmem [resolvable:$true] %s387_s15 }
  0x18   : > { %s2463_s17 = scalar_lea.vmem %s340_s26, 3072  ;;  %p2471_p11 = scmp.lt.s32.totalorder %s340_s26, %s340_s26 }
  0x19   : > { %p2247_p5 = pneg %p2861_p3  ;;  %p2464_p8 = scmp.ne.s32.totalorder %s340_s26, %s2463_s17 }
  0x1a   : > { %p2472_p12 = scmp.lt.s32.totalorder %s2463_s17, %s2463_s17 }
  0x1b   : > { %p2870_p6 = pnand %p2247_p5, %p3373_p1 }
  0x1c   : > { %p2473_p13 = por %p2472_p12, %p2471_p11 }
  0x1d   : > { %p2880_p7 = pneg %p2870_p6 }
  0x1f   : > { %p2466_p9 = pnand %p2464_p8, %p2880_p7 }
  0x21   : > { %p2467_p10 = pneg %p2466_p9 }
  0x23   : > { %p2474_p0 = pnand %p2473_p13, %p2467_p10 }
  0x25   : > { %2477 = shalt.err (!%p2474_p0)
}
  0x26   : > { %s3366_s18 = smov 64   ;;  %s3367_s19 = smov 4  }
  0x27   : > { %s3387_s2 = sld [smem:[#allocation27_spill]]  ;;  %s2489_s29 = scalar_lea.vmem %s2874_s30, 1024 }
  0x28   : > { %p2490_p2 = scmp.ne.s32.totalorder %s2874_s30, %s2489_s29  ;;  %p2497_p9 = scmp.lt.s32.totalorder %s2874_s30, %s2874_s30 }
  0x29   : > { %p2498_p10 = scmp.lt.s32.totalorder %s2489_s29, %s2489_s29 }
  0x2a   : > { %p2492_p5 = pnand %p2490_p2, %p2880_p7 }
  0x2b   : > { %p2499_p11 = por %p2498_p10, %p2497_p9 }
  0x2c   : > { %p2493_p8 = pneg %p2492_p5 }
  0x2d   : > { %2250 = dma.hbm_to_vmem [thread:$0]  (!%p2870_p6), %s3387_s2, 3072, %s340_s26, [#allocation6], %s3366_s18, %s3366_s18, %s3367_s19  }
  0x2e   : > { %p2500_p12 = pnand %p2499_p11, %p2493_p8 }
  0x30   : > { %2503 = shalt.err (!%p2500_p12)
}
  0x31   : > { %s3388_s4 = sld [smem:[#allocation28_spill]]  ;;  %s2515_s26 = scalar_lea.vmem %s2876_s15, 2048 }
  0x32   : > { %p2516_p13 = scmp.ne.s32.totalorder %s2876_s15, %s2515_s26  ;;  %p2523_p5 = scmp.lt.s32.totalorder %s2876_s15, %s2876_s15 }
  0x33   : > { %p2524_p8 = scmp.lt.s32.totalorder %s2515_s26, %s2515_s26 }
  0x34   : > { %p2518_p0 = pnand %p2516_p13, %p2880_p7 }
  0x35   : > { %p2525_p9 = por %p2524_p8, %p2523_p5 }
  0x36   : > { %p2519_p2 = pneg %p2518_p0 }
  0x37   : > { %2253 = dma.hbm_to_vmem [thread:$0]  (!%p2870_p6), %s3388_s4, 1024, %s2874_s30, [#allocation9], %s3366_s18, %s3366_s18, %s3367_s19  }
  0x38   : > { %p2526_p10 = pnand %p2525_p9, %p2519_p2 }
  0x3a   : > { %2529 = shalt.err (!%p2526_p10)
}
  0x3b   : > { %s3389_s8 = sld [smem:[#allocation30_spill]]  ;;  %s2755_s30 = smov [#allocation10]  }
  0x3c   : > { %s371_s29 = sshll.u32 %s2755_s30, 4  ;;  %s372_s29 = int_to_ptr.vmem [resolvable:$true] %s371_s29 }
  0x3d   : > { %s2541_s14 = scalar_lea.vmem %s372_s29, 2048  ;;  %p2549_p0 = scmp.lt.s32.totalorder %s372_s29, %s372_s29 }
  0x3e   : > { %p2542_p11 = scmp.ne.s32.totalorder %s372_s29, %s2541_s14  ;;  %p2550_p2 = scmp.lt.s32.totalorder %s2541_s14, %s2541_s14 }
  0x40   : > { %p2544_p12 = pnand %p2542_p11, %p2880_p7  ;;  %p2551_p5 = por %p2550_p2, %p2549_p0 }
  0x41   : > { %2259 = dma.hbm_to_vmem [thread:$0]  (!%p2870_p6), %s3389_s8, 2048, %s2876_s15, [#allocation12], %s3366_s18, %s3366_s18, %s3367_s19  }
  0x42   : > { %p2545_p13 = pneg %p2544_p12 }
  0x44   : > { %p2552_p8 = pnand %p2551_p5, %p2545_p13 }
  0x46   : > { %2555 = shalt.err (!%p2552_p8)
}
  0x47   : > { %s3368_s17 = smov 128   ;;  %s3370_s26 = smov 8  }
  0x48   : > { %s3390_s6 = sld [smem:[#allocation29_spill]]  ;;  %s2758_s25 = smov [#allocation13]  }
  0x49   : > { %s403_s30 = sshll.u32 %s2758_s25, 4  ;;  %s2759_s18 = smov [#allocation14]   ;;  %s404_s30 = int_to_ptr.vmem [resolvable:$true] %s403_s30 }
  0x4a   : > { %s416_s19 = sshll.u32 %s2759_s18, 4  ;;  %s2567_s14 = scalar_lea.vmem %s404_s30, 2048  ;;  %s417_s19 = int_to_ptr.vmem [resolvable:$true] %s416_s19 }
  0x4b   : > { %p2568_p9 = scmp.ne.s32.totalorder %s404_s30, %s2567_s14  ;;  %p2575_p12 = scmp.lt.s32.totalorder %s404_s30, %s404_s30 }
  0x4c   : > { %p2576_p13 = scmp.lt.s32.totalorder %s2567_s14, %s2567_s14 }
  0x4d   : > { %p2570_p10 = pnand %p2568_p9, %p2880_p7 }
  0x4e   : > { %2256 = dma.hbm_to_vmem [thread:$0]  (!%p2870_p6), %s3390_s6, 2048, %s372_s29, [#allocation9], %s3368_s17, %s3368_s17, %s3370_s26  }
  0x4f   : > { %p2571_p11 = pneg %p2570_p10  ;;  %p2577_p0 = por %p2576_p13, %p2575_p12 }
  0x51   : > { %p2578_p2 = pnand %p2577_p0, %p2571_p11 }
  0x53   : > { %2581 = shalt.err (!%p2578_p2)
}
  0x54   : > { %s3391_s15 = smov 4   ;;  %s3392_s29 = smov 64  }
  0x55   : > { %s3393_s10 = sld [smem:[#allocation31_spill]]  ;;  %s2593_s18 = scalar_lea.vmem %s417_s19, 512 }
  0x56   : > { %p2594_p5 = scmp.ne.s32.totalorder %s417_s19, %s2593_s18  ;;  %p2601_p10 = scmp.lt.s32.totalorder %s417_s19, %s417_s19 }
  0x57   : > { %p2602_p4 = scmp.lt.s32.totalorder %s2593_s18, %s2593_s18 }
  0x58   : > { %p2596_p8 = pnand %p2594_p5, %p2880_p7 }
  0x59   : > { %p2603_p12 = por %p2602_p4, %p2601_p10 }
  0x5a   : > { %p2597_p9 = pneg %p2596_p8 }
  0x5b   : > { %2262 = dma.hbm_to_vmem [thread:$0]  (!%p2870_p6), %s3393_s10, 2048, %s404_s30, [#allocation12], %s3392_s29, %s3392_s29, %s3391_s15  }
  0x5c   : > { %p2604_p11 = pnand %p2603_p12, %p2597_p9 }
  0x5e   : > { %2607 = shalt.err (!%p2604_p11)
}
  0x5f   : > { %s2760_s14 = smov 256   ;;  %s2761_s16 = smov 16  }
  0x60   : > { %s3394_s11 = sld [smem:[#allocation32_spill]]  ;;  %s1897_s29 = sadd.s32 4294967294, %s2748_s24  }
  0x61   : > { %s2953_s20 = sadd.s32 1, %s2748_s24   ;;  %s41_s18 = sadd.s32 1, %s2744_s23 }
  0x62   : > { %s38_s25 = ssub.s32 %s2748_s24, %s2953_s20  ;;  %p48_p7 = scmp.ne.s32.totalorder %s2744_s23, %s2740_s22 }
  0x63   : > { %p39_p4 = scmp.eq.s32.totalorder %s38_s25, 0  ;;  %p49_p13 = scmp.eq.s32.totalorder %s2748_s24, 0 }
  0x64   : > { %p54_p0 = scmp.ne.s32.totalorder %s2740_s22, %s2736_s21  ;;  %p314_p5 = scmp.eq.s32.totalorder %s2856_s27, 1 }
  0x65   : > { %s2964_s17 = scalar_select %p39_p4, %s2744_s23, %s41_s18  }
  0x66   : > { %2265 = dma.hbm_to_vmem [thread:$0]  (!%p2870_p6), %s3394_s11, 512, %s417_s19, [#allocation15], %s2760_s14, %s2760_s14, %s2761_s16  }
  0x67   : > { %3395 = sst [smem:[#allocation25_spill]] %s2964_s17  ;;  %p2966_p2 = por %p49_p13, %p48_p7 }
  0x68   : > { %p2972_p6 = por %p3373_p1, %p54_p0  ;;  %p320_p8 = scmp.eq.s32.totalorder %s1897_s29, 1 }
  0x69   : > { %p2283_p9 = scmp.lt.s32.totalorder %s2748_s24, 2  ;;  %s430_s14 = sand.u32 1, %s2744_s23  }
  0x6a   : > { %s3397_s19 = scalar_select %p2972_p6, 1, 0 }
  0x6b   : > { %p2979_p10 = por %p314_p5, %p48_p7  ;;  %p2983_p12 = por %p320_p8, %p54_p0 }
  0x6c   : > { %s1906_s15 = sshll.u32 %s430_s14, 4  ;;  %s2014_s25 = sshll.u32 %s2748_s24, 8 }
  0x6d   : > { %s3398_s16 = scalar_select %p2979_p10, 1, 0 }
  0x6e   : > { %s3399_s30 = scalar_select %p2983_p12, 1, 0 }
  0x6f   : > { %s3400_s0 = sld [smem:[#allocation26_spill]]  ;;  %s434_s29 = scalar_lea.vmem [#allocation2], %s1906_s15 }
  0x70   : > { %s441_s4 = sshll.u32 %s434_s29, 4  ;;  %p2997_p11 = pnand %p2283_p9, %p2966_p2  ;;  %s2993_s4 = int_to_ptr.vmem [resolvable:$true] %s441_s4 }
  0x71   : > { %s3004_s26 = scalar_lea.hbm %s3354_s1, %s2014_s25  ;;  %s455_s18 = scalar_lea.vmem [#allocation5], %s1906_s15 }
  0x72   : > { %s3006_s11 = sshll.u32 %s455_s18, 4  ;;  %s3008_s17 = scalar_lea.sflag [#allocation3], %s430_s14  ;;  %s3039_s11 = int_to_ptr.vmem [resolvable:$true] %s3006_s11 }
  0x73   : > { %p2610_p7 = pneg %p2997_p11 }
  0x75   : > { %s2991_s2 = scalar_lea.hbm %s3400_s0, %s2014_s25  ;;  %s2613_s8 = scalar_lea.hbm %s3400_s0, 512 }
  0x76   : > { %s2608_s29 = scalar_lea.hbm %s2991_s2, 256  ;;  %p2614_p2 = scmp.lt.s32.totalorder %s2991_s2, %s3400_s0 }
  0x77   : > { %p2609_p4 = scmp.ne.s32.totalorder %s2991_s2, %s2608_s29  ;;  %p2615_p5 = scmp.lt.s32.totalorder %s2613_s8, %s2608_s29 }
  0x79   : > { %p2611_p13 = pnand %p2610_p7, %p2609_p4  ;;  %p2616_p8 = por %p2615_p5, %p2614_p2 }
  0x7b   : > { %p2612_p0 = pneg %p2611_p13 }
  0x7d   : > { %p2617_p9 = pnand %p2616_p8, %p2612_p0 }
  0x7f   : > { %2620 = shalt.err (!%p2617_p9)
}
  0x80   : > { %s2621_s14 = scalar_lea.vmem %s2993_s4, 256  ;;  %s2762_s23 = smov [#allocation2]  }
  0x81   : > { %p2622_p1 = scmp.ne.s32.totalorder %s2993_s4, %s2621_s14  ;;  %s2626_s15 = sshll.u32 %s2762_s23, 4  ;;  %s2627_s15 = int_to_ptr.vmem [resolvable:$false] %s2626_s15 }
  0x82   : > { %s2628_s18 = scalar_lea.vmem %s2627_s15, 512  ;;  %p2629_p12 = scmp.lt.s32.totalorder %s2993_s4, %s2627_s15 }
  0x83   : > { %p2624_p4 = pnand %p2622_p1, %p2610_p7  ;;  %p2630_p10 = scmp.lt.s32.totalorder %s2628_s18, %s2621_s14 }
  0x85   : > { %p2625_p13 = pneg %p2624_p4  ;;  %p2631_p6 = por %p2630_p10, %p2629_p12 }
  0x87   : > { %p2632_p2 = pnand %p2631_p6, %p2625_p13 }
  0x89   : > { %2635 = shalt.err (!%p2632_p2)
}
  0x8a   : > { %s3402_s29 = smov 8   ;;  %s3403_s13 = smov 128  }
  0x8b   : > { %2269 = dma.hbm_to_vmem [thread:$0]  (!%p2997_p11), %s2991_s2, 256, %s2993_s4, %s3008_s17, %s3403_s13, %s3403_s13, %s3402_s29  }
  0x8c   : > { %s451_s8 = sand.u32 1, %s2748_s24   ;;  %s2636_s25 = scalar_lea.hbm %s3004_s26, 256 }
  0x8d   : > { %s452_s10 = scalar_lea.sflag [#allocation6], %s451_s8  ;;  %p2637_p1 = scmp.ne.s32.totalorder %s3004_s26, %s2636_s25 }
  0x8e   : > { %s2641_s15 = scalar_lea.hbm %s3354_s1, 512  ;;  %p2642_p12 = scmp.lt.s32.totalorder %s3004_s26, %s3354_s1 }
  0x8f   : > { %p2639_p6 = pnand %p2637_p1, %p2610_p7  ;;  %p2643_p0 = scmp.lt.s32.totalorder %s2641_s15, %s2636_s25 }
  0x91   : > { %p2640_p10 = pneg %p2639_p6  ;;  %p2644_p5 = por %p2643_p0, %p2642_p12 }
  0x93   : > { %p2645_p8 = pnand %p2644_p5, %p2640_p10 }
  0x95   : > { %2648 = shalt.err (!%p2645_p8)
}
  0x96   : > { %s2649_s2 = scalar_lea.vmem %s3039_s11, 256  ;;  %s2763_s4 = smov [#allocation5]  }
  0x97   : > { %p2650_p9 = scmp.ne.s32.totalorder %s3039_s11, %s2649_s2  ;;  %s2654_s17 = sshll.u32 %s2763_s4, 4  ;;  %s2655_s17 = int_to_ptr.vmem [resolvable:$false] %s2654_s17 }
  0x98   : > { %s2656_s8 = scalar_lea.vmem %s2655_s17, 512  ;;  %p2657_p2 = scmp.lt.s32.totalorder %s3039_s11, %s2655_s17 }
  0x99   : > { %p2652_p4 = pnand %p2650_p9, %p2610_p7  ;;  %p2658_p1 = scmp.lt.s32.totalorder %s2656_s8, %s2649_s2 }
  0x9b   : > { %p2653_p13 = pneg %p2652_p4  ;;  %p2659_p6 = por %p2658_p1, %p2657_p2 }
  0x9d   : > { %p2660_p12 = pnand %p2659_p6, %p2653_p13 }
  0x9f   : > { %2663 = shalt.err (!%p2660_p12)
}
  0xa0   : > { %2272 = dma.hbm_to_vmem [thread:$0]  (!%p2997_p11), %s3004_s26, 256, %s3039_s11, %s452_s10, %s3403_s13, %s3403_s13, %s3402_s29  }
  0xa1   : > { %474 = sbr.rel (%p2861_p3) target bundleno = 2027 (0x7eb), region = 68  ;;  %s3070_s0 = sand.u32 (!%p2861_p3), 1, %s2740_s22  }
  0xa2   : > { %s3073_s25 = sshll.u32 (!%p2861_p3), %s3070_s0, 4  ;;  %s477_s14 = scalar_lea.sflag (!%p2861_p3), [#allocation3], %s3070_s0 }
  0xa3   : > { %s480_s6 = scalar_lea.vmem (!%p2861_p3), [#allocation2], %s3073_s25  ;;  %p3404_p7 = scmp.ne.s32.totalorder (!%p2861_p3), %s3397_s19, 0 }
  0xa6   : > { %2707 = dma.done.wait (%p3404_p7), %s477_s14, 256  }
  0xa7   : > { %2709 = vsyncadd (%p3404_p7), %s477_s14, 4294967040  ;;  %s485_s11 = sand.u32 1, %s2856_s27   ;;  %s489_s26 = scalar_lea.vmem [#allocation5], %s3073_s25 }
  0xa8   : > { %s486_s28 = scalar_lea.sflag [#allocation6], %s485_s11 }
  0xa9   : > { %2711 = dma.done.wait (%p3404_p7), %s486_s28, 256  }
  0xaa   : > { %2713 = vsyncadd (%p3404_p7), %s486_s28, 4294967040  ;;  %p3405_p3 = scmp.eq.s32.totalorder %s2856_s27, 0 }
  0xac   : > { %2715 = dma.done.wait (%p3405_p3), [#allocation6], 3072   ;;  %p3406_p11 = pmov %p3405_p3 }
  0xad   : > { %p3407_p10 = pmov %p3405_p3 }
  0xae   : > { %2717 = vsyncadd (%p3406_p11), [#allocation6], 4294964224 }
  0xaf   : > { %2719 = dma.done.wait (%p3407_p10), [#allocation9], 3072   ;;  %p3408_p0 = pmov %p3405_p3 }
  0xb1   : > { %2721 = vsyncadd (%p3408_p0), [#allocation9], 4294964224  ;;  %p3409_p5 = pmov %p3408_p0 }
  0xb2   : > { %p3410_p8 = pmov %p3408_p0 }
  0xb3   : > { %2723 = dma.done.wait (%p3409_p5), [#allocation12], 4096  }
  0xb4   : > { %2725 = vsyncadd (%p3410_p8), [#allocation12], 4294963200  ;;  %p3411_p9 = pmov %p3408_p0 }
  0xb5   : > { %p3412_p4 = pmov %p3408_p0 }
  0xb6   : > { %2727 = dma.done.wait (%p3411_p9), [#allocation15], 512  }
  0xb7   : > { %2729 = vsyncadd (%p3412_p4), [#allocation15], 4294966784  ;;  %v3103_v0 = vld [vmem:[%s480_s6] sm:$0xff]  ;;  %v3105_v1 = vld [vmem:[%s480_s6 + $0x8] sm:$0xff]  ;;  %v2764_v3 = vmov 0.0   ;;  %vm2765_vm0 = vmmov 0  }
  0xb8   : > { %564 = vadd.xlane.f32.xlu0 %v3103_v0  ;;  %v2340_v2 = vld [vmem:[#allocation7 + $0x38] sm:$0xff]   ;;  %2137 = vmatprep.subr.bf16.mxu0 %v2764_v3  ;;  %v2341_v4 = vld [vmem:[#allocation7 + $0x30] sm:$0xff]   ;;  %v2342_v6 = vld [vmem:[#allocation7 + $0x28] sm:$0xff]   ;;  %s558_s6 = scalar_lea.vmem [#allocation16], %s3073_s25  ;;  %s2016_s28 = sshll.u32 %s2856_s27, 8 }
  0xb9   : > { %2153 = vmatprep.mubr.msk.bf16.mxu0 %vm2765_vm0, %v2764_v3  ;;  %2138 = vmatpush3.bf16.msra.mxu0 %v2340_v2  ;;  %v2348_v5 = vld [vmem:[#allocation7 + $0x78] sm:$0xff]   ;;  %v2350_v7 = vld [vmem:[#allocation7 + $0x70] sm:$0xff]   ;;  %v2343_v8 = vld [vmem:[#allocation7 + $0x20] sm:$0xff]   ;;  %s1744_s11 = sshll.u32 %s558_s6, 4  ;;  %s3309_s29 = scalar_lea.hbm %s3365_s12, %s2016_s28  ;;  %s3304_s11 = int_to_ptr.vmem [resolvable:$true] %s1744_s11 }
  0xba   : > { %2157 = vmatprep.subr.bf16.mxu1 %v2764_v3  ;;  %2139 = vmatprep.subr.bf16.mxu0 %v2764_v3  ;;  %v2344_v9 = vld [vmem:[#allocation7 + $0x18] sm:$0xff]   ;;  %v2345_v10 = vld [vmem:[#allocation7 + $0x10] sm:$0xff]   ;;  %v2346_v11 = vld [vmem:[#allocation7 + $0x8] sm:$0xff]   ;;  %s1731_s25 = scalar_lea.sflag [#allocation4], %s3070_s0  ;;  %s2664_s13 = scalar_lea.vmem %s3304_s11, 256 }
  0xbb   : > { %2173 = vmatprep.mubr.msk.bf16.mxu1 %vm2765_vm0, %v2764_v3  ;;  %2158 = vmatpush3.bf16.msra.mxu1 %v2348_v5  ;;  %v2347_v12 = vld [vmem:[#allocation7] sm:$0xff]   ;;  %v563_v14 = vld [vmem:[%s489_s26 + $0x8] sm:$0xff]  ;;  %v2351_v17 = vld [vmem:[#allocation7 + $0xb0] sm:$0xff]   ;;  %p2665_p13 = scmp.ne.s32.totalorder %s3304_s11, %s2664_s13  ;;  %p3413_p2 = scmp.ne.s32.totalorder %s3398_s16, 0 }
  0xbc   : > { %566 = vadd.xlane.f32.xlu0 %v3105_v1  ;;  %2159 = vmatprep.subr.bf16.mxu1 %v2764_v3  ;;  %v562_v13 = vld [vmem:[%s489_s26] sm:$0xff]  ;;  %v2349_v15 = vld [vmem:[#allocation7 + $0xb8] sm:$0xff]   ;;  %v2352_v26 = vld [vmem:[#allocation7 + $0x68] sm:$0xff]   ;;  %s2767_s27 = smov [#allocation16]  }
  0xbd   : > { %2140 = vmatpush3.bf16.msra.mxu0 %v2341_v4  ;;  %v587_v16 = vpack.c.bf16 %v563_v14, %v562_v13  ;;  %v2353_v27 = vld [vmem:[#allocation7 + $0xa8] sm:$0xff]   ;;  %v2354_v28 = vld [vmem:[#allocation7 + $0x60] sm:$0xff]   ;;  %v2356_v30 = vld [vmem:[#allocation7 + $0x58] sm:$0xff]   ;;  %p2666_p1 = pnand %p2665_p13, %p3413_p2  ;;  %s2668_s10 = sshll.u32 %s2767_s27, 4  ;;  %s2669_s10 = int_to_ptr.vmem [resolvable:$false] %s2668_s10 }
  0xbe   : > { %2141 = vmatprep.subr.bf16.mxu0 %v2764_v3  ;;  %v2355_v29 = vld [vmem:[#allocation7 + $0xa0] sm:$0xff]   ;;  %v2357_v31 = vld [vmem:[#allocation7 + $0x98] sm:$0xff]   ;;  %v2358_v32 = vld [vmem:[#allocation7 + $0x50] sm:$0xff]   ;;  %s2670_s23 = scalar_lea.vmem %s2669_s10, 512  ;;  %p2671_p12 = scmp.lt.s32.totalorder %s3304_s11, %s2669_s10 }
  0xbf   : > { %2160 = vmatpush3.bf16.msra.mxu1 %v2350_v7  ;;  %v2359_v33 = vld [vmem:[#allocation7 + $0x90] sm:$0xff]   ;;  %v2360_v34 = vld [vmem:[#allocation7 + $0x48] sm:$0xff]   ;;  %v2362_v36 = vld [vmem:[#allocation7 + $0x40] sm:$0xff]   ;;  %p2667_p6 = pneg %p2666_p1  ;;  %p2672_p7 = scmp.lt.s32.totalorder %s2670_s23, %s2664_s13 }
  0xc0   : > { %2161 = vmatprep.subr.bf16.mxu1 %v2764_v3  ;;  %v2361_v35 = vld [vmem:[#allocation7 + $0x88] sm:$0xff]   ;;  %v2363_v37 = vld [vmem:[#allocation7 + $0x80] sm:$0xff]   ;;  %v3165_v14 = vld [vmem:[#allocation13 + $0x70] sm:$0xff]  }
  0xc1   : > { %2142 = vmatpush3.bf16.msra.mxu0 %v2342_v6  ;;  %v1922_v48 = vld [vmem:[%s3356_s3] ss:$0 sm:$0xff]  ;;  %v1932_v59 = vld [vmem:[%s3356_s3 + $0x1] ss:$0 sm:$0xff]  ;;  %v1942_v60 = vld [vmem:[%s3356_s3 + $0x2] ss:$0 sm:$0xff]  ;;  %p2673_p3 = por %p2672_p7, %p2671_p12 }
  0xc2   : > { %2143 = vmatprep.subr.bf16.mxu0 %v2764_v3 }
  0xc3   : > { %2162 = vmatpush3.bf16.msra.mxu1 %v2352_v26  ;;  %v3189_v26 = vld [vmem:[#allocation13 + $0x60] sm:$0xff]   ;;  %p2674_p11 = pnand %p2673_p3, %p2667_p6 }
  0xc4   : > { %2163 = vmatprep.subr.bf16.mxu1 %v2764_v3 }
  0xc5   : > { %2144 = vmatpush3.bf16.msra.mxu0 %v2343_v8  ;;  %v3157_v8 = vld [vmem:[#allocation13 + $0x78] sm:$0xff]  }
  0xc6   : > { %2145 = vmatprep.subr.bf16.mxu0 %v2764_v3 }
  0xc7   : > { %2164 = vmatpush3.bf16.msra.mxu1 %v2354_v28 }
  0xc8   : > { %2165 = vmatprep.subr.bf16.mxu1 %v2764_v3 }
  0xc9   : > { %2146 = vmatpush3.bf16.msra.mxu0 %v2344_v9  ;;  %v3159_v9 = vld [vmem:[#allocation13 + $0x38] sm:$0xff]  }
  0xca   : > { %2147 = vmatprep.subr.bf16.mxu0 %v2764_v3 }
  0xcb   : > { %2166 = vmatpush3.bf16.msra.mxu1 %v2356_v30 }
  0xcc   : > { %2167 = vmatprep.subr.bf16.mxu1 %v2764_v3 }
  0xcd   : > { %2148 = vmatpush3.bf16.msra.mxu0 %v2345_v10 }
  0xce   : > { %2149 = vmatprep.subr.bf16.mxu0 %v2764_v3 }
  0xcf   : > { %2168 = vmatpush3.bf16.msra.mxu1 %v2358_v32  ;;  %v3201_v32 = vld [vmem:[#allocation13 + $0x58] sm:$0xff]  }
  0xd0   : > { %2169 = vmatprep.subr.bf16.mxu1 %v2764_v3 }
  0xd1   : > { %2150 = vmatpush3.bf16.msra.mxu0 %v2346_v11 }
  0xd2   : > { %2151 = vmatprep.subr.bf16.mxu0 %v2764_v3 }
  0xd3   : > { %2170 = vmatpush3.bf16.msra.mxu1 %v2360_v34  ;;  %v3205_v34 = vld [vmem:[#allocation13 + $0x18] sm:$0xff]  }
  0xd4   : > { %2171 = vmatprep.subr.bf16.mxu1 %v2764_v3 }
  0xd5   : > { %2152 = vmatpush3.bf16.msra.mxu0 %v2347_v12 }
  0xd6   : > { %2177 = vmatprep.subr.bf16.mxu0 %v2764_v3 }
  0xd7   : > { %2172 = vmatpush3.bf16.msra.mxu1 %v2362_v36  ;;  %v3209_v36 = vld [vmem:[#allocation13 + $0x50] sm:$0xff]  }
  0xd8   : > { %2154 = vmatmul.mubr.bf16.vlgmr.msra.gmra.mxu0 %v587_v16 }
  0xd9   : > { %2178 = vmatpush3.bf16.msra.mxu0 %v2349_v15  ;;  %2193 = vmatprep.mubr.msk.bf16.mxu0 %vm2765_vm0, %v2764_v3 }
  0xda   : > { %2179 = vmatprep.subr.bf16.mxu0 %v2764_v3 }
  0xdd   : > { %2180 = vmatpush3.bf16.msra.mxu0 %v2351_v17 }
  0xde   : > { %2181 = vmatprep.subr.bf16.mxu0 %v2764_v3 }
  0xe1   : > { %2182 = vmatpush3.bf16.msra.mxu0 %v2353_v27 }
  0xe2   : > { %2183 = vmatprep.subr.bf16.mxu0 %v2764_v3 }
  0xe5   : > { %2184 = vmatpush3.bf16.msra.mxu0 %v2355_v29  ;;  %v3195_v29 = vld [vmem:[#allocation13 + $0x20] sm:$0xff]  }
  0xe6   : > { %2185 = vmatprep.subr.bf16.mxu0 %v2764_v3 }
  0xe9   : > { %2186 = vmatpush3.bf16.msra.mxu0 %v2357_v31 }
  0xea   : > { %2187 = vmatprep.subr.bf16.mxu0 %v2764_v3 }
  0xed   : > { %2188 = vmatpush3.bf16.msra.mxu0 %v2359_v33 }
  0xee   : > { %2189 = vmatprep.subr.bf16.mxu0 %v2764_v3 }
  0xf1   : > { %2190 = vmatpush3.bf16.msra.mxu0 %v2361_v35 }
  0xf2   : > { %2191 = vmatprep.subr.bf16.mxu0 %v2764_v3 }
  0xf5   : > { %2192 = vmatpush3.bf16.msra.mxu0 %v2363_v37 }
 0x141   : > { %v565_v18 = vpop.xlane.xlu0 %564 }
 0x142   : > { %v569_v19 = vmul.f32 0.0078125, %v565_v18 }
 0x144   : > { %v571_v20 = vsub.f32 %v3103_v0, %v569_v19  ;;  %v3175_v19 = vld [vmem:[#allocation13 + $0x30] sm:$0xff]  }
 0x145   : > { %v567_v21 = vpop.xlane.xlu0 %566 }
 0x146   : > { %v570_v22 = vmul.f32 0.0078125, %v567_v21  ;;  %v573_v23 = vmul.f32 %v571_v20, %v571_v20 }
 0x148   : > { %v572_v24 = vsub.f32 %v3105_v1, %v570_v22  ;;  %575 = vadd.xlane.f32.xlu1 %v573_v23  ;;  %v3181_v22 = vld [vmem:[#allocation13 + $0x68] sm:$0xff]  }
 0x14a   : > { %v574_v25 = vmul.f32 %v572_v24, %v572_v24 }
 0x14c   : > { %577 = vadd.xlane.f32.xlu1 %v574_v25 }
 0x198   : > { %v694_v38 = vpop.f32.mrf.mxu0 }
 0x199   : > { %v695_v50 = vadd.f32 %v1922_v48, %v694_v38 }
 0x19a   : > { %v2155_v39 = vpop.f32.mrf.mxu0 }
 0x19b   : > { %v3215_v39 = vld [vmem:[#allocation13 + $0x10] sm:$0xff]  }
 0x19c   : > { %v697_v40 = vpop.f32.mrf.mxu0 }
 0x19d   : > { %v698_v51 = vadd.f32 %v1922_v48, %v697_v40 }
 0x19e   : > { %v2156_v41 = vpop.f32.mrf.mxu0 }
 0x19f   : > { %v3148_v55 = vpack.c.bf16 %v698_v51, %v695_v50 }
 0x1d1   : > { %v576_v42 = vpop.xlane.xlu1 %575 }
 0x1d2   : > { %v579_v43 = vmul.f32 0.0078125, %v576_v42  ;;  %v3221_v42 = vld [vmem:[#allocation13 + $0x48] sm:$0xff]  }
 0x1d4   : > { %v581_v44 = vadd.f32 1e-05, %v579_v43 }
 0x1d5   : > { %v578_v45 = vpop.xlane.xlu1 %577 }
 0x1d6   : > { %v580_v46 = vmul.f32 0.0078125, %v578_v45  ;;  %2428 = vrsqrt.f32 %v581_v44  ;;  %v3225_v44 = vld [vmem:[#allocation13 + $0x8] sm:$0xff]  }
 0x1d8   : > { %v582_v47 = vadd.f32 1e-05, %v580_v46  ;;  %v3229_v46 = vld [vmem:[#allocation13 + $0x40] sm:$0xff]  }
 0x1da   : > { %2430 = vrsqrt.f32 %v582_v47 }
 0x1e3   : > { %v2429_v49 = vpop.eup %2428 }
 0x1e4   : > { %v585_v53 = vmul.f32 %v2429_v49, %v571_v20  ;;  %v3235_v49 = vld [vmem:[#allocation13] sm:$0xff]  }
 0x1e7   : > { %v2431_v52 = vpop.eup %2430 }
 0x1e8   : > { %v586_v54 = vmul.f32 %v2431_v52, %v572_v24  ;;  %v3185_v24 = vld [vmem:[#allocation13 + $0x28] sm:$0xff]  }
 0x1ea   : > { %v588_v56 = vpack.c.bf16 %v586_v54, %v585_v53 }
 0x1ec   : > { %2174 = vmatmul.mubr.bf16.vlgmr.msra.gmra.mxu1 %v588_v56  ;;  %2194 = vmatmul.mubr.bf16.vlgmr.msra.gmra.mxu0 %v588_v56 }
 0x1ed   : > { %2060 = vmatprep.mubr.bf16.mxu1 %v3148_v55 }
 0x2ac   : > { %v808_v57 = vpop.f32.mrf.mxu1  ;;  %v922_v58 = vpop.f32.mrf.mxu0 }
 0x2ad   : > { %v809_v4 = vadd.f32 %v1932_v59, %v808_v57  ;;  %v923_v5 = vadd.f32 %v1942_v60, %v922_v58 }
 0x2ae   : > { %v2175_v61 = vpop.f32.mrf.mxu1  ;;  %v2195_v62 = vpop.f32.mrf.mxu0 }
 0x2af   : > { %v1092_v61 = vld [vmem:[#allocation14] sm:$0xff] }
 0x2b0   : > { %v811_v63 = vpop.f32.mrf.mxu1  ;;  %v925_v2 = vpop.f32.mrf.mxu0 }
 0x2b1   : > { %v812_v6 = vadd.f32 %v1932_v59, %v811_v63  ;;  %v926_v7 = vadd.f32 %v1942_v60, %v925_v2  ;;  %v1093_v63 = vld [vmem:[#allocation14 + $0x8] sm:$0xff] }
 0x2b2   : > { %v2176_v10 = vpop.f32.mrf.mxu1  ;;  %v2196_v11 = vpop.f32.mrf.mxu0 }
 0x2b3   : > { %v3161_v12 = vpack.c.bf16 %v812_v6, %v809_v4  ;;  %v3163_v13 = vpack.c.bf16 %v926_v7, %v923_v5  ;;  %v1094_v6 = vld [vmem:[#allocation14 + $0x10] sm:$0xff] }
 0x2b5   : > { %v1073_v15 = vmul.bf16 %v3157_v8, %v3161_v12  ;;  %v1090_v16 = vmul.bf16 %v3157_v8, %v3163_v13  ;;  %v1065_v17 = vmul.bf16 %v3159_v9, %v3161_v12  ;;  %v1082_v18 = vmul.bf16 %v3159_v9, %v3163_v13 }
 0x2b6   : > { %v1072_v20 = vmul.bf16 %v3165_v14, %v3161_v12  ;;  %v1089_v21 = vmul.bf16 %v3165_v14, %v3163_v13  ;;  %v1081_v23 = vmul.bf16 %v3175_v19, %v3163_v13  ;;  %v1088_v25 = vmul.bf16 %v3181_v22, %v3163_v13 }
 0x2b7   : > { %2044 = vmatprep.subr.bf16.mxu1 %v1073_v15  ;;  %2062 = vmatprep.subr.bf16.mxu0 %v1090_v16  ;;  %v1064_v27 = vmul.bf16 %v3175_v19, %v3161_v12  ;;  %v1080_v28 = vmul.bf16 %v3185_v24, %v3163_v13  ;;  %v1071_v30 = vmul.bf16 %v3181_v22, %v3161_v12 }
 0x2b8   : > { %2045 = vmatpush3.bf16.xpose.msra.mxu1 %v1065_v17  ;;  %2063 = vmatpush3.bf16.msra.mxu0 %v1082_v18  ;;  %v1087_v31 = vmul.bf16 %v3189_v26, %v3163_v13  ;;  %v1079_v33 = vmul.bf16 %v3195_v29, %v3163_v13  ;;  %v1086_v35 = vmul.bf16 %v3201_v32, %v3163_v13 }
 0x2b9   : > { %2046 = vmatprep.subr.bf16.mxu1 %v1072_v20  ;;  %2064 = vmatprep.subr.bf16.mxu0 %v1089_v21  ;;  %v1063_v37 = vmul.bf16 %v3185_v24, %v3161_v12  ;;  %v1078_v38 = vmul.bf16 %v3205_v34, %v3163_v13  ;;  %v1070_v40 = vmul.bf16 %v3189_v26, %v3161_v12 }
 0x2ba   : > { %v1085_v41 = vmul.bf16 %v3209_v36, %v3163_v13  ;;  %v1077_v43 = vmul.bf16 %v3215_v39, %v3163_v13  ;;  %v1084_v45 = vmul.bf16 %v3221_v42, %v3163_v13  ;;  %v1062_v47 = vmul.bf16 %v3195_v29, %v3161_v12 }
 0x2bb   : > { %v1076_v48 = vmul.bf16 %v3225_v44, %v3163_v13  ;;  %v1069_v50 = vmul.bf16 %v3201_v32, %v3161_v12  ;;  %v1083_v51 = vmul.bf16 %v3229_v46, %v3163_v13  ;;  %v1075_v52 = vmul.bf16 %v3235_v49, %v3163_v13 }
 0x2bc   : > { %2065 = vmatpush3.bf16.msra.mxu0 %v1081_v23  ;;  %v1061_v53 = vmul.bf16 %v3205_v34, %v3161_v12  ;;  %v1068_v54 = vmul.bf16 %v3209_v36, %v3161_v12  ;;  %v1060_v56 = vmul.bf16 %v3215_v39, %v3161_v12  ;;  %v1067_v57 = vmul.bf16 %v3221_v42, %v3161_v12 }
 0x2bd   : > { %2066 = vmatprep.subr.bf16.mxu0 %v1088_v25  ;;  %v1059_v58 = vmul.bf16 %v3225_v44, %v3161_v12  ;;  %v1066_v59 = vmul.bf16 %v3229_v46, %v3161_v12  ;;  %v1058_v60 = vmul.bf16 %v3235_v49, %v3161_v12 }
 0x2c0   : > { %2047 = vmatpush3.bf16.xpose.msra.mxu1 %v1064_v27  ;;  %2067 = vmatpush3.bf16.msra.mxu0 %v1080_v28 }
 0x2c1   : > { %2048 = vmatprep.subr.bf16.mxu1 %v1071_v30  ;;  %2068 = vmatprep.subr.bf16.mxu0 %v1087_v31 }
 0x2c4   : > { %2069 = vmatpush3.bf16.msra.mxu0 %v1079_v33 }
 0x2c5   : > { %2070 = vmatprep.subr.bf16.mxu0 %v1086_v35 }
 0x2c8   : > { %2049 = vmatpush3.bf16.xpose.msra.mxu1 %v1063_v37  ;;  %2071 = vmatpush3.bf16.msra.mxu0 %v1078_v38 }
 0x2c9   : > { %2050 = vmatprep.subr.bf16.mxu1 %v1070_v40  ;;  %2072 = vmatprep.subr.bf16.mxu0 %v1085_v41  ;;  %v2391_v40 = vld [vmem:[#allocation10 + $0x60] ss:$8 sps:$4 sm:$0xff]   ;;  %v2396_v41 = vld [vmem:[#allocation10 + $0x54] ss:$8 sps:$4 sm:$0xff]  }
 0x2cc   : > { %2073 = vmatpush3.bf16.msra.mxu0 %v1077_v43  ;;  %v2399_v43 = vld [vmem:[#allocation10 + $0x44] ss:$8 sps:$4 sm:$0xff]  }
 0x2cd   : > { %2074 = vmatprep.subr.bf16.mxu0 %v1084_v45  ;;  %v2402_v45 = vld [vmem:[#allocation10 + $0x34] ss:$8 sps:$4 sm:$0xff]  }
 0x2d0   : > { %2051 = vmatpush3.bf16.xpose.msra.mxu1 %v1062_v47  ;;  %2075 = vmatpush3.bf16.msra.mxu0 %v1076_v48  ;;  %v2403_v47 = vld [vmem:[#allocation10 + $0x20] ss:$8 sps:$4 sm:$0xff]  }
 0x2d1   : > { %2052 = vmatprep.subr.bf16.mxu1 %v1069_v50  ;;  %2076 = vmatprep.subr.bf16.mxu0 %v1083_v51 }
 0x2d4   : > { %2077 = vmatpush3.bf16.msra.mxu0 %v1075_v52 }
 0x2d5   : > { %2084 = vmatprep.subr.bf16.mxu0 %v3157_v8  ;;  %v1095_v8 = vld [vmem:[#allocation14 + $0x18] sm:$0xff] }
 0x2d8   : > { %2053 = vmatpush3.bf16.xpose.msra.mxu1 %v1061_v53 }
 0x2d9   : > { %2054 = vmatprep.subr.bf16.mxu1 %v1068_v54 }
 0x2e0   : > { %2055 = vmatpush3.bf16.xpose.msra.mxu1 %v1060_v56 }
 0x2e1   : > { %2056 = vmatprep.subr.bf16.mxu1 %v1067_v57 }
 0x2e8   : > { %2057 = vmatpush3.bf16.xpose.msra.mxu1 %v1059_v58 }
 0x2e9   : > { %2058 = vmatprep.subr.bf16.mxu1 %v1066_v59 }
 0x2f0   : > { %2059 = vmatpush3.bf16.xpose.msra.mxu1 %v1058_v60 }
 0x2f1   : > { %2197 = vmatprep.subr.bf16.mxu1 %v2764_v3 }
 0x2f7   : > { %2061 = vmatmul.mubr.bf16.vlgmr.msra.gmra.mxu1 %v3148_v55 }
 0x2f8   : > { %2213 = vmatprep.mubr.msk.bf16.mxu1 %vm2765_vm0, %v2764_v3 }
 0x3b7   : > { %v1130_v62 = vpop.f32.mrf.mxu1 }
 0x3b8   : > { %v1131_v4 = vadd.f32 %v1130_v62, %v1092_v61 }
 0x3b9   : > { %v1132_v2 = vpop.f32.mrf.mxu1 }
 0x3ba   : > { %v1133_v5 = vadd.f32 %v1132_v2, %v1093_v63 }
 0x3bb   : > { %v1134_v7 = vpop.f32.mrf.mxu1 }
 0x3bc   : > { %v1139_v10 = vmax.f32 %v1131_v4, %v1133_v5  ;;  %v1135_v12 = vadd.f32 %v1134_v7, %v1094_v6  ;;  %v2408_v6 = vld [vmem:[#allocation10 + $0x14] ss:$8 sps:$4 sm:$0xff]   ;;  %v2409_v7 = vld [vmem:[#allocation10] ss:$8 sps:$4 sm:$0xff]  }
 0x3bd   : > { %v1136_v11 = vpop.f32.mrf.mxu1 }
 0x3be   : > { %v1137_v13 = vadd.f32 %v1136_v11, %v1095_v8  ;;  %1140 = vmax.xlane.f32.xlu0 %v1139_v10  ;;  %v2411_v8 = vld [vmem:[#allocation10 + $0x4] ss:$8 sps:$4 sm:$0xff]   ;;  %v2766_v10 = vmov 0   ;;  %v1967_v11 = vld [vmem:[%s3358_s5] ss:$0 sm:$0xff] }
 0x3c0   : > { %v1142_v15 = vmax.f32 %v1135_v12, %v1137_v13 }
 0x3c2   : > { %1143 = vmax.xlane.f32.xlu1 %v1142_v15 }
 0x447   : > { %v1141_v55 = vpop.xlane.xlu0 %1140 }
 0x448   : > { %v1145_v16 = vsub.f32 %v1131_v4, %v1141_v55  ;;  %v1146_v17 = vsub.f32 %v1133_v5, %v1141_v55  ;;  %v2406_v5 = vld [vmem:[#allocation10 + $0x10] ss:$8 sps:$4 sm:$0xff]  }
 0x44a   : > { %v1149_v18 = vmul.f32 1.442695, %v1145_v16  ;;  %v1151_v20 = vmul.f32 1.442695, %v1146_v17 }
 0x44b   : > { %v1144_v21 = vpop.xlane.xlu1 %1143 }
 0x44c   : > { %v1147_v23 = vsub.f32 %v1135_v12, %v1144_v21  ;;  %v1148_v25 = vsub.f32 %v1137_v13, %v1144_v21  ;;  %2432 = vpow2.f32 %v1149_v18 }
 0x44d   : > { %2434 = vpow2.f32 %v1151_v20 }
 0x44e   : > { %v1153_v27 = vmul.f32 1.442695, %v1147_v23  ;;  %v1155_v28 = vmul.f32 1.442695, %v1148_v25  ;;  %v2412_v23 = vld [vmem:[#allocation11 + $0x78] sm:$0xff]  }
 0x44f   : > { %v2413_v25 = vld [vmem:[#allocation11 + $0x38] sm:$0xff]  }
 0x450   : > { %2436 = vpow2.f32 %v1153_v27  ;;  %v2414_v27 = vld [vmem:[#allocation11 + $0x70] sm:$0xff]  }
 0x451   : > { %2438 = vpow2.f32 %v1155_v28  ;;  %v2415_v28 = vld [vmem:[#allocation11 + $0x30] sm:$0xff]  }
 0x459   : > { %v2433_v30 = vpop.eup %2432 }
 0x45a   : > { %v2435_v31 = vpop.eup %2434 }
 0x45d   : > { %v2437_v33 = vpop.eup %2436 }
 0x45e   : > { %v2439_v35 = vpop.eup %2438  ;;  %v1157_v37 = vpack.c.bf16 %v2437_v33, %v2433_v30  ;;  %v2416_v30 = vld [vmem:[#allocation11 + $0x68] sm:$0xff]   ;;  %v2419_v33 = vld [vmem:[#allocation11 + $0x20] sm:$0xff]  }
 0x45f   : > { %v1158_v38 = vpack.c.bf16 %v2439_v35, %v2435_v31  ;;  %v2417_v31 = vld [vmem:[#allocation11 + $0x28] sm:$0xff]   ;;  %v2421_v35 = vld [vmem:[#allocation11 + $0x18] sm:$0xff]  }
 0x461   : > { %1191 = vmatprep.mubr.bf16.mxu0 %v1158_v38 }
 0x462   : > { %1192 = vmatmul.mubr.bf16.vlgmr.msra.gmra.mxu0 %v1157_v37 }
 0x463   : > { %2085 = vmatpush3.bf16.msra.mxu0 %v3159_v9  ;;  %1232 = vmatprep.mubr.bf16.mxu0 %v1158_v38  ;;  %v2380_v9 = vld [vmem:[#allocation8 + $0x38] sm:$0xff]   ;;  %v2423_v38 = vld [vmem:[#allocation11 + $0x10] sm:$0xff]  }
 0x464   : > { %2086 = vmatprep.subr.bf16.mxu0 %v3165_v14  ;;  %2198 = vmatpush3.bf16.msra.mxu1 %v2380_v9  ;;  %v2381_v14 = vld [vmem:[#allocation8 + $0x30] sm:$0xff]   ;;  %v2424_v9 = vld [vmem:[#allocation11 + $0x48] sm:$0xff]  }
 0x465   : > { %2199 = vmatprep.subr.bf16.mxu1 %v2764_v3 }
 0x467   : > { %2087 = vmatpush3.bf16.msra.mxu0 %v3175_v19  ;;  %v2382_v19 = vld [vmem:[#allocation8 + $0x28] sm:$0xff]  }
 0x468   : > { %2088 = vmatprep.subr.bf16.mxu0 %v3181_v22  ;;  %2200 = vmatpush3.bf16.msra.mxu1 %v2381_v14  ;;  %v2383_v22 = vld [vmem:[#allocation8 + $0x20] sm:$0xff]   ;;  %v2425_v14 = vld [vmem:[#allocation11 + $0x8] sm:$0xff]  }
 0x469   : > { %2201 = vmatprep.subr.bf16.mxu1 %v2764_v3 }
 0x46b   : > { %2089 = vmatpush3.bf16.msra.mxu0 %v3185_v24  ;;  %v2384_v24 = vld [vmem:[#allocation8 + $0x18] sm:$0xff]  }
 0x46c   : > { %2090 = vmatprep.subr.bf16.mxu0 %v3189_v26  ;;  %2202 = vmatpush3.bf16.msra.mxu1 %v2382_v19  ;;  %v2385_v26 = vld [vmem:[#allocation8 + $0x10] sm:$0xff]   ;;  %v2426_v19 = vld [vmem:[#allocation11 + $0x40] sm:$0xff]  }
 0x46d   : > { %2203 = vmatprep.subr.bf16.mxu1 %v2764_v3 }
 0x46f   : > { %2091 = vmatpush3.bf16.msra.mxu0 %v3195_v29  ;;  %v2386_v29 = vld [vmem:[#allocation8 + $0x8] sm:$0xff]  }
 0x470   : > { %2092 = vmatprep.subr.bf16.mxu0 %v3201_v32  ;;  %2204 = vmatpush3.bf16.msra.mxu1 %v2383_v22  ;;  %v2387_v32 = vld [vmem:[#allocation8] sm:$0xff]  }
 0x471   : > { %2205 = vmatprep.subr.bf16.mxu1 %v2764_v3  ;;  %v2427_v22 = vld [vmem:[#allocation11] sm:$0xff]  }
 0x473   : > { %2093 = vmatpush3.bf16.msra.mxu0 %v3205_v34  ;;  %v2388_v34 = vld [vmem:[#allocation10 + $0x70] ss:$8 sps:$4 sm:$0xff]  }
 0x474   : > { %2094 = vmatprep.subr.bf16.mxu0 %v3209_v36  ;;  %2206 = vmatpush3.bf16.msra.mxu1 %v2384_v24  ;;  %v2390_v36 = vld [vmem:[#allocation10 + $0x74] ss:$8 sps:$4 sm:$0xff]   ;;  %v1379_v24 = vlaneseq }
 0x475   : > { %2207 = vmatprep.subr.bf16.mxu1 %v2764_v3 }
 0x477   : > { %2095 = vmatpush3.bf16.msra.mxu0 %v3215_v39  ;;  %v2393_v39 = vld [vmem:[#allocation10 + $0x64] ss:$8 sps:$4 sm:$0xff]  }
 0x478   : > { %2096 = vmatprep.subr.bf16.mxu0 %v3221_v42  ;;  %2208 = vmatpush3.bf16.msra.mxu1 %v2385_v26  ;;  %v2394_v42 = vld [vmem:[#allocation10 + $0x50] ss:$8 sps:$4 sm:$0xff]   ;;  %v1380_v26 = vshrl.u32 %v1379_v24, 7 }
 0x479   : > { %2209 = vmatprep.subr.bf16.mxu1 %v2764_v3 }
 0x47b   : > { %2097 = vmatpush3.bf16.msra.mxu0 %v3225_v44  ;;  %v2397_v44 = vld [vmem:[#allocation10 + $0x40] ss:$8 sps:$4 sm:$0xff]  }
 0x47c   : > { %2098 = vmatprep.subr.bf16.mxu0 %v3229_v46  ;;  %2210 = vmatpush3.bf16.msra.mxu1 %v2386_v29  ;;  %v2400_v46 = vld [vmem:[#allocation10 + $0x30] ss:$8 sps:$4 sm:$0xff]   ;;  %v1381_v29 = vsub.s32 0, %v1380_v26 }
 0x47d   : > { %2211 = vmatprep.subr.bf16.mxu1 %v2764_v3  ;;  %v2405_v3 = vld [vmem:[#allocation10 + $0x24] ss:$8 sps:$4 sm:$0xff]  }
 0x47f   : > { %2099 = vmatpush3.bf16.msra.mxu0 %v3235_v49 }
 0x480   : > { %2212 = vmatpush3.bf16.msra.mxu1 %v2387_v32  ;;  %1469 = vmatprep.subr.bf16.mxu0 %v2390_v36  ;;  %v1377_v32 = vld [vmem:[%s3360_s7] sm:$0x3] }
 0x481   : > { %2115 = vmatprep.subr.bf16.mxu1 %v2412_v23  ;;  %v1382_v36 = vrot.slane %v1377_v32, %v1381_v29 }
 0x482   : > { %1233 = vmatmul.mubr.bf16.vlgmr.msra.gmra.mxu0 %v1157_v37  ;;  %v2422_v37 = vld [vmem:[#allocation11 + $0x50] sm:$0xff]  }
 0x483   : > { %1470 = vmatpush1.bf16.msra.mxu0 %v2388_v34  ;;  %1501 = vmatprep.mubr.bf16.mxu0 %v2766_v10  ;;  %v1385_v34 = vsub.s32 1, %v1380_v26 }
 0x484   : > { %1471 = vmatprep.subr.bf16.mxu0 %v2393_v39 }
 0x485   : > { %v1386_v39 = vrot.slane %v1377_v32, %v1385_v34 }
 0x487   : > { %1472 = vmatpush1.bf16.msra.mxu0 %v2391_v40 }
 0x488   : > { %1473 = vmatprep.subr.bf16.mxu0 %v2396_v41 }
 0x48b   : > { %1474 = vmatpush1.bf16.msra.mxu0 %v2394_v42 }
 0x48c   : > { %1475 = vmatprep.subr.bf16.mxu0 %v2399_v43 }
 0x48f   : > { %1476 = vmatpush1.bf16.msra.mxu0 %v2397_v44 }
 0x490   : > { %1477 = vmatprep.subr.bf16.mxu0 %v2402_v45 }
 0x493   : > { %1478 = vmatpush1.bf16.msra.mxu0 %v2400_v46 }
 0x494   : > { %1479 = vmatprep.subr.bf16.mxu0 %v2405_v3 }
 0x497   : > { %1480 = vmatpush1.bf16.msra.mxu0 %v2403_v47 }
 0x498   : > { %1481 = vmatprep.subr.bf16.mxu0 %v2408_v6 }
 0x49b   : > { %1482 = vmatpush1.bf16.msra.mxu0 %v2406_v5 }
 0x49c   : > { %1483 = vmatprep.subr.bf16.mxu0 %v2411_v8 }
 0x49f   : > { %1484 = vmatpush1.bf16.msra.mxu0 %v2409_v7 }
 0x522   : > { %v2078_v48 = vpop.f32.mrf.mxu0 }
 0x524   : > { %v2079_v49 = vpop.f32.mrf.mxu0 }
 0x525   : > { %v2080_v60 = vadd.f32 %v2079_v49, %v2078_v48 }
 0x526   : > { %v2081_v50 = vpop.f32.mrf.mxu0 }
 0x528   : > { %v2082_v51 = vpop.f32.mrf.mxu0 }
 0x529   : > { %v2083_v61 = vadd.f32 %v2082_v51, %v2081_v50 }
 0x542   : > { %v2100_v52 = vpop.f32.mrf.mxu0 }
 0x544   : > { %v2101_v53 = vpop.f32.mrf.mxu0 }
 0x545   : > { %v2102_v54 = vadd.f32 %v2101_v53, %v2100_v52 }
 0x546   : > { %v2103_v56 = vpop.f32.mrf.mxu0 }
 0x547   : > { %2440 = vrcp.f32 %v2102_v54 }
 0x548   : > { %v2104_v57 = vpop.f32.mrf.mxu0 }
 0x549   : > { %v2105_v58 = vadd.f32 %v2104_v57, %v2103_v56 }
 0x54b   : > { %2442 = vrcp.f32 %v2105_v58 }
 0x554   : > { %v2441_v59 = vpop.eup %2440 }
 0x555   : > { %v1243_v63 = vmul.f32 %v2441_v59, %v2080_v60 }
 0x558   : > { %v2443_v62 = vpop.eup %2442 }
 0x559   : > { %v1244_v2 = vmul.f32 %v2443_v62, %v2083_v61 }
 0x55b   : > { %v1245_v4 = vpack.c.bf16 %v1244_v2, %v1243_v63 }
 0x55d   : > { %2214 = vmatmul.mubr.bf16.vlgmr.msra.gmra.mxu1 %v1245_v4 }
 0x55e   : > { %2116 = vmatpush3.bf16.msra.mxu1 %v2413_v25 }
 0x55f   : > { %2117 = vmatprep.subr.bf16.mxu1 %v2414_v27 }
 0x562   : > { %2118 = vmatpush3.bf16.msra.mxu1 %v2415_v28 }
 0x563   : > { %2119 = vmatprep.subr.bf16.mxu1 %v2416_v30 }
 0x566   : > { %2120 = vmatpush3.bf16.msra.mxu1 %v2417_v31 }
 0x61d   : > { %v1351_v12 = vpop.f32.mrf.mxu1 }
 0x61e   : > { %v1352_v15 = vadd.f32 %v1967_v11, %v1351_v12 }
 0x61f   : > { %v2215_v13 = vpop.f32.mrf.mxu1 }
 0x620   : > { %v3288_v18 = vadd.f32 %v1352_v15, %v3103_v0  ;;  %v2418_v0 = vld [vmem:[#allocation11 + $0x60] sm:$0xff]  }
 0x621   : > { %v1354_v55 = vpop.f32.mrf.mxu1  ;;  %2121 = vmatprep.subr.bf16.mxu1 %v2418_v0 }
 0x622   : > { %v1355_v16 = vadd.f32 %v1967_v11, %v1354_v55  ;;  %2122 = vmatpush3.bf16.msra.mxu1 %v2419_v33 }
 0x623   : > { %v2216_v17 = vpop.f32.mrf.mxu1 }
 0x624   : > { %v3291_v20 = vadd.f32 %v1355_v16, %v3105_v1  ;;  %v2420_v1 = vld [vmem:[#allocation11 + $0x58] sm:$0xff]  }
 0x625   : > { %2123 = vmatprep.subr.bf16.mxu1 %v2420_v1  ;;  %v1992_v1 = vld [vmem:[%s3362_s9] ss:$0 sm:$0xff] }
 0x626   : > { %v1360_v21 = vpack.c.bf16 %v3291_v20, %v3288_v18  ;;  %2124 = vmatpush3.bf16.msra.mxu1 %v2421_v35 }
 0x627   : > { %2125 = vmatprep.subr.bf16.mxu1 %v2422_v37 }
 0x628   : > { %1502 = vmatmul.mubr.bf16.vlgmr.msra.gmra.mxu0 %v1360_v21 }
 0x62a   : > { %2126 = vmatpush3.bf16.msra.mxu1 %v2423_v38 }
 0x62b   : > { %2127 = vmatprep.subr.bf16.mxu1 %v2424_v9 }
 0x62e   : > { %2128 = vmatpush3.bf16.msra.mxu1 %v2425_v14 }
 0x62f   : > { %2129 = vmatprep.subr.bf16.mxu1 %v2426_v19 }
 0x632   : > { %2130 = vmatpush3.bf16.msra.mxu1 %v2427_v22 }
 0x6e8   : > { %v1503_v40 = vpop.f32.mrf.mxu0 }
 0x6e9   : > { %v1504_v41 = vadd.f32 %v1503_v40, %v1382_v36 }
 0x6ea   : > { %v1505_v42 = vpop.f32.mrf.mxu0 }
 0x6eb   : > { %v1516_v43 = vmul.f32 0.044715, %v1504_v41  ;;  %v1506_v44 = vadd.f32 %v1505_v42, %v1386_v39  ;;  %v1512_v23 = vmul.f32 0.5, %v1504_v41 }
 0x6ec   : > { %v1507_v45 = vpop.f32.mrf.mxu0 }
 0x6ed   : > { %v1520_v46 = vmul.f32 %v1516_v43, %v1504_v41  ;;  %v1517_v3 = vmul.f32 0.044715, %v1506_v44  ;;  %v1508_v47 = vadd.f32 %v1507_v45, %v1382_v36  ;;  %v1513_v16 = vmul.f32 0.5, %v1506_v44 }
 0x6ee   : > { %v1509_v48 = vpop.f32.mrf.mxu0 }
 0x6ef   : > { %v1524_v49 = vmul.f32 %v1520_v46, %v1504_v41  ;;  %v1521_v50 = vmul.f32 %v1517_v3, %v1506_v44  ;;  %v1518_v51 = vmul.f32 0.044715, %v1508_v47  ;;  %v1510_v52 = vadd.f32 %v1509_v48, %v1386_v39 }
 0x6f0   : > { %v1514_v15 = vmul.f32 0.5, %v1508_v47 }
 0x6f1   : > { %v1528_v53 = vadd.f32 %v1524_v49, %v1504_v41  ;;  %v1525_v54 = vmul.f32 %v1521_v50, %v1506_v44  ;;  %v1522_v56 = vmul.f32 %v1518_v51, %v1508_v47  ;;  %v1519_v57 = vmul.f32 0.044715, %v1510_v52 }
 0x6f2   : > { %v1515_v17 = vmul.f32 0.5, %v1510_v52 }
 0x6f3   : > { %v1526_v58 = vmul.f32 %v1522_v56, %v1508_v47  ;;  %v1523_v59 = vmul.f32 %v1519_v57, %v1510_v52  ;;  %v1529_v60 = vadd.f32 %v1525_v54, %v1506_v44  ;;  %v1532_v61 = vmul.f32 0.7978846, %v1528_v53 }
 0x6f5   : > { %v1530_v62 = vadd.f32 %v1526_v58, %v1508_v47  ;;  %v1527_v63 = vmul.f32 %v1523_v59, %v1510_v52  ;;  %v1533_v2 = vmul.f32 0.7978846, %v1529_v60 }
 0x6f7   : > { %v1534_v4 = vmul.f32 0.7978846, %v1530_v62  ;;  %v1531_v5 = vadd.f32 %v1527_v63, %v1510_v52  ;;  %2444 = vtanh.f32 %v1533_v2 }
 0x6f8   : > { %2446 = vtanh.f32 %v1532_v61 }
 0x6f9   : > { %2448 = vtanh.f32 %v1534_v4  ;;  %v1535_v6 = vmul.f32 0.7978846, %v1531_v5 }
 0x6fb   : > { %2450 = vtanh.f32 %v1535_v6 }
 0x704   : > { %v2445_v7 = vpop.eup %2444 }
 0x705   : > { %v2447_v8 = vpop.eup %2446  ;;  %v1541_v11 = vadd.f32 1.0, %v2445_v7 }
 0x706   : > { %v2449_v10 = vpop.eup %2448  ;;  %v1540_v55 = vadd.f32 1.0, %v2447_v8 }
 0x707   : > { %v1542_v12 = vadd.f32 1.0, %v2449_v10  ;;  %v1545_v27 = vmul.f32 %v1541_v11, %v1513_v16 }
 0x708   : > { %v2451_v13 = vpop.eup %2450  ;;  %v1544_v30 = vmul.f32 %v1540_v55, %v1512_v23 }
 0x709   : > { %v1543_v21 = vadd.f32 1.0, %v2451_v13  ;;  %v1546_v25 = vmul.f32 %v1542_v12, %v1514_v15 }
 0x70b   : > { %v1547_v28 = vmul.f32 %v1543_v21, %v1515_v17  ;;  %v1548_v0 = vpack.c.bf16 %v1546_v25, %v1544_v30 }
 0x70d   : > { %v1549_v31 = vpack.c.bf16 %v1547_v28, %v1545_v27 }
 0x70f   : > { %1717 = vmatprep.mubr.bf16.mxu1 %v1549_v31 }
 0x710   : > { %1718 = vmatmul.mubr.bf16.vlgmr.msra.gmra.mxu1 %v1548_v0 }
 0x7d0   : > { %v2131_v33 = vpop.f32.mrf.mxu1 }
 0x7d2   : > { %v2132_v35 = vpop.f32.mrf.mxu1 }
 0x7d3   : > { %v2133_v37 = vadd.f32 %v2132_v35, %v2131_v33 }
 0x7d4   : > { %v2134_v38 = vpop.f32.mrf.mxu1 }
 0x7d5   : > { %v1720_v9 = vadd.f32 %v2133_v37, %v1992_v1 }
 0x7d6   : > { %v2135_v14 = vpop.f32.mrf.mxu1 }
 0x7d7   : > { %v1726_v19 = vadd.f32 %v1720_v9, %v3288_v18  ;;  %v2136_v22 = vadd.f32 %v2135_v14, %v2134_v38 }
 0x7d9   : > { %1728 = vst [vmem:[%s558_s6] sm:$0xff] %v1726_v19  ;;  %v1723_v24 = vadd.f32 %v2136_v22, %v1992_v1 }
 0x7db   : > { %v1727_v26 = vadd.f32 %v1723_v24, %v3291_v20 }
 0x7dd   : > { %1729 = vst [vmem:[%s558_s6 + $0x8] sm:$0xff] %v1727_v26 }
 0x7de   : > { %2677 = shalt.err (!%p2674_p11)
}
 0x7df   : > { %s2678_s15 = scalar_lea.hbm %s3309_s29, 256  ;;  %s2682_s4 = scalar_lea.hbm %s3365_s12, 512 }
 0x7e0   : > { %p2679_p10 = scmp.ne.s32.totalorder %s3309_s29, %s2678_s15  ;;  %p2683_p8 = scmp.lt.s32.totalorder %s3309_s29, %s3365_s12 }
 0x7e1   : > { %p2684_p9 = scmp.lt.s32.totalorder %s2682_s4, %s2678_s15 }
 0x7e2   : > { %p2680_p0 = pnand %p2679_p10, %p3413_p2 }
 0x7e3   : > { %p2685_p4 = por %p2684_p9, %p2683_p8 }
 0x7e4   : > { %p2681_p5 = pneg %p2680_p0 }
 0x7e6   : > { %p2686_p13 = pnand %p2685_p4, %p2681_p5 }
 0x7e8   : > { %2689 = shalt.err (!%p2686_p13)
}
 0x7e9   : > { %s2768_s14 = smov 128   ;;  %s2769_s6 = smov 8  }
 0x7ea   : > { %2245 = dma.vmem_to_hbm [thread:$0]  (%p3413_p2), %s3304_s11, 256, %s3309_s29, %s1731_s25, %s2768_s14, %s2768_s14, %s2769_s6  }
 0x7eb PF: > { %s1759_s28 = sand.u32 1, %s2736_s21   ;;  %p3414_p1 = scmp.ne.s32.totalorder %s3399_s30, 0 }
 0x7ec   : > { %p3415_p6 = scmp.ge.s32.totalorder %s2748_s24, 2  ;;  %s1760_s26 = scalar_lea.sflag [#allocation4], %s1759_s28 }
 0x7ee   : > { %p2274_p12 = pnand %p3415_p6, %p3414_p1 }
 0x7f0   : > { %p2275_p7 = pneg %p2274_p12 }
 0x7f2   : > { %2731 = dma.done.wait (%p2275_p7), %s1760_s26, 256  }
 0x7f3   : > { %2733 = vsyncadd (%p2275_p7), %s1760_s26, 4294967040  ;;  %s3416_s19 = sld [smem:[#allocation24_spill]]  ;;  %p31_p3 = scmp.ge.s32.totalorder %s2953_s20, 4  }
 0x7f4   : > { %s3417_s23 = sld [smem:[#allocation25_spill]]  ;;  %s3418_s21 = smov %s2740_s22 }
 0x7f5   : > { %s3420_s24 = smov %s2953_s20  ;;  %33 = sbr.rel (!%p31_p3) target bundleno = 18 (0x12), region = 154 }
 0x7f9   : > { %s3419_s22 = smov %s3416_s19 }
 0x7fa   :  { %1765 = vsyncpa [#allocation3], 1 }
 0x7fb   :  { %1767 = vsyncpa [#allocation3 + $0x1], 1 }
 0x7fc   :  { %1768 = vsyncpa [#allocation6], 1 }
 0x7fd   :  { %1770 = vsyncpa [#allocation6 + $0x1], 1 }
 0x7fe   :  { %1771 = vsyncpa [#allocation9], 1 }
 0x7ff   :  { %1772 = vsyncpa [#allocation12], 1 }
 0x800   :  { %1773 = vsyncpa [#allocation15], 1 }
 0x801   :  { %1774 = vsyncpa [#allocation4], 1 }
 0x802   :  { %1776 = vsyncpa [#allocation4 + $0x1], 1 }

</bundles_post_ra>
